<compile_context>
chip_gen: v7x
topology: tpu7x:2x2x1
jax: 0.10.0
libtpu: 0.0.40
codegen_flags: <defaults>
</compile_context>

<pallas_src>
import math
import numpy as np
import jax
import jax.numpy as jnp
from jax.experimental import pallas as pl
from jax.experimental.pallas import tpu as pltpu


def _round_up(x, m):
    return ((x + m - 1) // m) * m


# --------------------------------------------------------------------------- #
# Kernel 1: tiled matmul + bias (+ ReLU) — every conv layer (im2col GEMM).
# --------------------------------------------------------------------------- #
def _linear_kernel(act):
    def kernel(x_ref, w_ref, b_ref, o_ref):
        y = jnp.dot(x_ref[...], w_ref[...], preferred_element_type=jnp.float32)
        y = y + b_ref[...]
        if act == "relu":
            y = jnp.maximum(y, 0.0)
        o_ref[...] = y.astype(o_ref.dtype)
    return kernel


def _pick_row_tile(M, tile_m):
    """Largest row tile that still gives >= 2 grid steps when M >= 16
    (so v7x's second TensorCore is not idle on the 'parallel' axis)."""
    if M <= 16:
        return M, M
    tm = min(tile_m, _round_up((M + 1) // 2, 8))
    return tm, _round_up(M, tm)


def pallas_linear(x, w, b, act="none", tile_m=1024, out_dtype=jnp.bfloat16):
    """y = act(x @ w + b).  bf16 MXU inputs, f32 accumulate, out_dtype epilogue."""
    M, K = x.shape
    N = w.shape[1]
    x = x.astype(jnp.bfloat16)
    w = w.astype(jnp.bfloat16)
    b2 = b.reshape(1, N).astype(jnp.float32)

    tm, Mp = _pick_row_tile(M, tile_m)
    if Mp != M:
        x = jnp.pad(x, ((0, Mp - M), (0, 0)))

    out = pl.pallas_call(
        _linear_kernel(act),
        out_shape=jax.ShapeDtypeStruct((Mp, N), out_dtype),
        grid=(Mp // tm,),
        in_specs=[pl.BlockSpec((tm, K), lambda i: (i, 0)),
                  pl.BlockSpec((K, N), lambda i: (0, 0)),
                  pl.BlockSpec((1, N), lambda i: (0, 0))],
        out_specs=pl.BlockSpec((tm, N), lambda i: (i, 0)),
        compiler_params=pltpu.CompilerParams(
            dimension_semantics=("parallel",)),
    )(x, w, b2)
    return out if Mp == M else out[:M]


# --------------------------------------------------------------------------- #
# Kernel 2: fused FC head + hyper-net + integrand layer-1(h) — batched over B.
#   fc1 -> ReLU -> fc2  =>  emb
#   emb -> n1 -> ReLU -> n2 -> ReLU -> n3              =>  hyp  (offset|logscale)
#   emb -> i1_wh (+ i1_b)                              =>  pre1 (node-invariant)
# --------------------------------------------------------------------------- #
def _head_kernel(x_ref, w1, b1, w2, b2,
                 n1w, n1b, n2w, n2b, n3w, n3b,
                 i1wh, i1b,
                 hyp_ref, pre1_ref):
    bf16 = jnp.bfloat16
    h = jnp.dot(x_ref[...], w1[...], preferred_element_type=jnp.float32) + b1[...]
    h = jnp.maximum(h, 0.0)
    emb = jnp.dot(h.astype(bf16), w2[...],
                  preferred_element_type=jnp.float32) + b2[...]
    embb = emb.astype(bf16)
    a = jnp.maximum(
        jnp.dot(embb, n1w[...], preferred_element_type=jnp.float32) + n1b[...], 0.0)
    a = jnp.maximum(
        jnp.dot(a.astype(bf16), n2w[...],
                preferred_element_type=jnp.float32) + n2b[...], 0.0)
    hyp_ref[...] = jnp.dot(a.astype(bf16), n3w[...],
                           preferred_element_type=jnp.float32) + n3b[...]
    pre1_ref[...] = jnp.dot(embb, i1wh[...],
                            preferred_element_type=jnp.float32) + i1b[...]


def pallas_head(x, p):
    B, flat = x.shape
    H1 = p["i1_wh"].shape[1]
    O2 = p["n3_w"].shape[1]              # 2 * numberOfOutputs
    bf16 = jnp.bfloat16

    if B <= 8:
        tb, Bp = B, B
    else:
        tb = min(256, _round_up((B + 1) // 2, 8))
        Bp = _round_up(B, tb)
        if Bp != B:
            x = jnp.pad(x, ((0, Bp - B), (0, 0)))

    weights = [p["fc1_w"].astype(bf16), p["fc1_b"].reshape(1, -1),
               p["fc2_w"].astype(bf16), p["fc2_b"].reshape(1, -1),
               p["n1_w"].astype(bf16), p["n1_b"].reshape(1, -1),
               p["n2_w"].astype(bf16), p["n2_b"].reshape(1, -1),
               p["n3_w"].astype(bf16), p["n3_b"].reshape(1, -1),
               p["i1_wh"].astype(bf16), p["i1_b"].reshape(1, -1)]

    def _full(shape):
        zeros = (0,) * len(shape)
        return pl.BlockSpec(shape, lambda i, z=zeros: z)

    in_specs = [pl.BlockSpec((tb, flat), lambda i: (i, 0))]
    in_specs += [_full(w.shape) for w in weights]

    hyp, pre1 = pl.pallas_call(
        _head_kernel,
        out_shape=(jax.ShapeDtypeStruct((Bp, O2), jnp.float32),
                   jax.ShapeDtypeStruct((Bp, H1), jnp.float32)),
        grid=(Bp // tb,),
        in_specs=in_specs,
        out_specs=(pl.BlockSpec((tb, O2), lambda i: (i, 0)),
                   pl.BlockSpec((tb, H1), lambda i: (i, 0))),
        compiler_params=pltpu.CompilerParams(
            dimension_semantics=("parallel",)),
    )(x.astype(bf16), *weights)
    return hyp[:B], pre1[:B]


# --------------------------------------------------------------------------- #
# Kernel 3: fused MonotonicNN integral (batched CC quadrature slab) + sigmoid,
#           gridded over batch, output stored in its final (O, Ns) layout.
# --------------------------------------------------------------------------- #
def _compute_cc_weights(nb_steps):
    """Clenshaw-Curtis weights & nodes, as in the UMNN reference code."""
    lam = np.arange(0, nb_steps + 1, 1).reshape(-1, 1)
    lam = np.cos((lam @ lam.T) * math.pi / nb_steps)
    lam[:, 0] = 0.5
    lam[:, -1] = 0.5 * lam[:, -1]
    lam = lam * 2 / nb_steps
    W = np.arange(0, nb_steps + 1, 1).reshape(-1, 1)
    W[np.arange(1, nb_steps + 1, 2)] = 0
    W = 2.0 / (1 - W ** 2)
    W[0] = 1
    W[np.arange(1, nb_steps + 1, 2)] = 0
    cc_weights = (lam.T @ W).reshape(-1)                          # (T,)
    steps = np.cos(np.arange(0, nb_steps + 1).reshape(-1) * math.pi / nb_steps)
    return cc_weights.astype(np.float64), steps.astype(np.float64)


def _umnn_kernel(num_outputs):
    O = num_outputs
    bf16 = jnp.bfloat16

    def kernel(q_ref, xt_ref, pre1_ref, hyp_ref,
               i1wx, i2w, i2b, i3w, i3b, sel_ref, out_ref):
        qcol = q_ref[0]                      # (Ns, 1)
        xt = xt_ref[0]                       # (T*Ns, 1): c_t * q_s (node-major)
        pre1 = pre1_ref[0]                   # (1, H1), node-invariant h part
        hyp = hyp_ref[0]                     # (1, 2*O)
        offset = hyp[:, :O]                  # (1, O)
        scaling = jnp.exp(hyp[:, O:])        # (1, O)

        # Integrand MLP for ALL quadrature nodes as one (T*Ns, H) slab.
        a1 = jnp.maximum(pre1 + xt * i1wx[...], 0.0)                   # (T*Ns, H1)
        a2 = jnp.dot(a1.astype(bf16), i2w[...],
                     preferred_element_type=jnp.float32) + i2b[...]    # (T*Ns, H2)
        a2 = jnp.maximum(a2, 0.0)
        a3 = jnp.dot(a2.astype(bf16), i3w[...],
                     preferred_element_type=jnp.float32) + i3b[...]    # (T*Ns, O)
        # ELU + 1 (clamped before exp for robustness)
        z = jnp.where(a3 > 0.0, a3, jnp.exp(jnp.minimum(a3, 0.0)) - 1.0) + 1.0

        # CC-weighted reduction over nodes: sel[s, t*Ns+s] = cc_w[t]
        integral = jnp.dot(sel_ref[...], z,
                           preferred_element_type=jnp.float32) * (qcol * 0.5)
        cdf = scaling * integral + offset                              # (Ns, O)
        sig = 1.0 / (1.0 + jnp.exp(-cdf))                              # exact sigmoid
        out_ref[0] = jnp.transpose(sig)                                # (O, Ns)
    return kernel


def pallas_umnn(q, hyp, pre1, p, num_outputs, nb_steps, Ns):
    B = hyp.shape[0]
    O = num_outputs
    H1 = pre1.shape[1]
    T = nb_steps + 1
    bf16 = jnp.bfloat16

    cc_w, steps = _compute_cc_weights(nb_steps)
    coeff = ((steps + 1.0) * 0.5).astype(np.float32)            # (T,) node coeffs
    sel = np.zeros((Ns, T * Ns), np.float32)
    for t in range(T):
        sel[np.arange(Ns), t * Ns + np.arange(Ns)] = cc_w[t]
    sel = jnp.asarray(sel)

    q2 = q.reshape(B, Ns).astype(jnp.float32)
    # Quadrature node positions x_t = q * (cc_node_t + 1)/2, node-major rows
    # (replaces the former N=1 MXU matmul with a precomputed tiny VPU input).
    xt = (jnp.asarray(coeff)[None, :, None] * q2[:, None, :]).reshape(B, T * Ns, 1)
    q3 = q2.reshape(B, Ns, 1)
    pre1_3 = pre1.reshape(B, 1, H1)
    hyp3 = hyp.reshape(B, 1, 2 * O)

    weights = [p["i1_wx"].reshape(1, -1).astype(jnp.float32),
               p["i2_w"].astype(bf16), p["i2_b"].reshape(1, -1),
               p["i3_w"].astype(bf16), p["i3_b"].reshape(1, -1)]

    def _full(shape):
        zeros = (0,) * len(shape)
        return pl.BlockSpec(shape, lambda b, z=zeros: z)

    in_specs = [pl.BlockSpec((1, Ns, 1), lambda b: (b, 0, 0)),
                pl.BlockSpec((1, T * Ns, 1), lambda b: (b, 0, 0)),
                pl.BlockSpec((1, 1, H1), lambda b: (b, 0, 0)),
                pl.BlockSpec((1, 1, 2 * O), lambda b: (b, 0, 0))]
    in_specs += [_full(w.shape) for w in weights]
    in_specs += [_full(sel.shape)]

    out = pl.pallas_call(
        _umnn_kernel(O),
        out_shape=jax.ShapeDtypeStruct((B, O, Ns), jnp.float32),
        grid=(B,),
        in_specs=in_specs,
        out_specs=pl.BlockSpec((1, O, Ns), lambda b: (b, 0, 0)),
        compiler_params=pltpu.CompilerParams(
            dimension_semantics=("parallel",)),
    )(q3, xt, pre1_3, hyp3, *weights, sel)

    # torch.cat(torch.chunk(x.T, B, dim=1), 0) layout -> free reshape.
    return out.reshape(B * O, Ns)


# --------------------------------------------------------------------------- #
# Plain-JAX glue: NHWC im2col (bf16), parameter init, model assembly
# --------------------------------------------------------------------------- #
def im2col_nhwc(x, K, stride):
    """x: NHWC (bf16) -> (B*OH*OW, K*K*C) patches, feature order (kh, kw, c)."""
    B, H, W, C = x.shape
    OH = (H - K) // stride + 1
    OW = (W - K) // stride + 1
    cols = []
    for ki in range(K):
        for kj in range(K):
            patch = x[:, ki: ki + stride * (OH - 1) + 1: stride,
                         kj: kj + stride * (OW - 1) + 1: stride, :]
            cols.append(patch)
    cols = jnp.stack(cols, axis=3)                        # (B, OH, OW, K*K, C)
    return cols.reshape(B * OH * OW, K * K * C), OH, OW


def conv2d_pallas(x, w, b, stride, act="relu"):
    """NHWC conv as bf16 im2col + tiled Pallas GEMM.  w: (K, K, Cin, Cout)."""
    K, _, Cin, Cout = w.shape
    cols, OH, OW = im2col_nhwc(x, K, stride)              # bf16 patch matrix
    y = pallas_linear(cols, w.reshape(K * K * Cin, Cout), b, act=act,
                      out_dtype=jnp.bfloat16)
    return y.reshape(x.shape[0], OH, OW, Cout)            # stays NHWC, bf16


def _uniform(key, shape, fan_in):
    bound = 1.0 / math.sqrt(fan_in)
    return jax.random.uniform(key, shape, jnp.float32, -bound, bound)


def init_params(key, num_inputs, num_outputs, structure_umnn, state_embedding,
                spatial, fc_hidden=128):
    ks = jax.random.split(key, 24)
    p = {}
    # ---- DNN_Atari conv stack (HWIO weights for NHWC compute) ----
    p["c1_w"] = _uniform(ks[0], (8, 8, num_inputs, 32), num_inputs * 8 * 8)
    p["c1_b"] = _uniform(ks[1], (32,), num_inputs * 8 * 8)
    p["c2_w"] = _uniform(ks[2], (4, 4, 32, 64), 32 * 4 * 4)
    p["c2_b"] = _uniform(ks[3], (64,), 32 * 4 * 4)
    p["c3_w"] = _uniform(ks[4], (3, 3, 64, 64), 64 * 3 * 3)
    p["c3_b"] = _uniform(ks[5], (64,), 64 * 3 * 3)
    o1 = (spatial - 8) // 4 + 1
    o2 = (o1 - 4) // 2 + 1
    o3 = (o2 - 3) // 1 + 1
    flat = 64 * o3 * o3
    # fc1 rows follow the NHWC flatten (equivalent to the PyTorch NCHW flatten
    # up to a fixed permutation of freshly-initialized rows).
    p["fc1_w"] = _uniform(ks[6], (flat, fc_hidden), flat)
    p["fc1_b"] = _uniform(ks[7], (fc_hidden,), flat)
    p["fc2_w"] = _uniform(ks[8], (fc_hidden, state_embedding), fc_hidden)
    p["fc2_b"] = _uniform(ks[9], (state_embedding,), fc_hidden)
    # ---- MonotonicNN hyper-net: E -> H1 -> H2 -> 2*O ----
    H1, H2 = structure_umnn
    E, O = state_embedding, num_outputs
    p["n1_w"] = _uniform(ks[10], (E, H1), E)
    p["n1_b"] = _uniform(ks[11], (H1,), E)
    p["n2_w"] = _uniform(ks[12], (H1, H2), H1)
    p["n2_b"] = _uniform(ks[13], (H2,), H1)
    p["n3_w"] = _uniform(ks[14], (H2, 2 * O), H2)
    p["n3_b"] = _uniform(ks[15], (2 * O,), H2)
    # ---- IntegrandNN: (E+1) -> H1 -> H2 -> O (first layer split x / h) ----
    p["i1_wx"] = _uniform(ks[16], (1, H1), E + 1)
    p["i1_wh"] = _uniform(ks[17], (E, H1), E + 1)
    p["i1_b"] = _uniform(ks[18], (H1,), E + 1)
    p["i2_w"] = _uniform(ks[19], (H1, H2), H1)
    p["i2_b"] = _uniform(ks[20], (H2,), H1)
    p["i3_w"] = _uniform(ks[21], (H2, O), H2)
    p["i3_b"] = _uniform(ks[22], (O,), H2)
    return p


def umdqn_c_forward(p, state, q, num_outputs, nb_steps):
    """Reproduces UMDQN_C_Model_Atari.forward(state, q)."""
    B = state.shape[0]
    Ns = q.shape[0] // B
    # NCHW -> NHWC once; bf16 BEFORE im2col so patch matrices are bf16 in HBM.
    x = state.transpose(0, 2, 3, 1).astype(jnp.bfloat16)
    x = conv2d_pallas(x, p["c1_w"], p["c1_b"], stride=4)
    x = conv2d_pallas(x, p["c2_w"], p["c2_b"], stride=2)
    x = conv2d_pallas(x, p["c3_w"], p["c3_b"], stride=1)
    x = x.reshape(B, -1)                                  # NHWC flatten, bf16
    # fc1+fc2+hyper-net+integrand-layer-1(h) fused, batched over B.
    hyp, pre1 = pallas_head(x, p)
    # per-batch CC-quadrature UMNN + scaling/offset + sigmoid, final layout.
    return pallas_umnn(q, hyp, pre1, p, num_outputs, nb_steps, Ns)  # (B*O, Ns)


# --------------------------------------------------------------------------- #
# Demo
# --------------------------------------------------------------------------- #
if __name__ == "__main__":
    B = 2                    # batch
    C_IN = 4                 # numberOfInputs (stacked Atari frames)
    SPATIAL = 36             # small Atari-like frame
    NUM_OUTPUTS = 4          # numberOfOutputs (actions)
    STRUCTURE_UMNN = [64, 64]
    STATE_EMBEDDING = 32
    NB_STEPS = 16            # numberOfSteps for the UMNN quadrature
    NS = 8                   # return samples per state -> len(q) = B*NS

    key = jax.random.PRNGKey(0)
    k_param, k_state, k_q = jax.random.split(key, 3)

    params = init_params(k_param, C_IN, NUM_OUTPUTS, STRUCTURE_UMNN,
                         STATE_EMBEDDING, SPATIAL)

    state = jax.random.normal(k_state, (B, C_IN, SPATIAL, SPATIAL), jnp.float32)
    q = jax.random.uniform(k_q, (B * NS, 1), jnp.float32, -10.0, 10.0)

    fwd = jax.jit(lambda s, qq: umdqn_c_forward(params, s, qq,
                                                NUM_OUTPUTS, NB_STEPS))
    out = fwd(state, q)
    jax.block_until_ready(out)

    assert out.shape == (B * NUM_OUTPUTS, NS), out.shape
    assert bool(jnp.all(jnp.isfinite(out)))
    assert bool(jnp.all((out >= 0.0) & (out <= 1.0)))   # exact sigmoid -> true CDF range
    print("KERNEL_OK")
</pallas_src>

<mosaic_0001>
module attributes {stable_mosaic.version = 11 : i64} {
  func.func @kernel(%arg0: i32, %arg1: memref<64x256xbf16, #tpu.memory_space<vmem>>, %arg2: memref<256x32xbf16, #tpu.memory_space<vmem>>, %arg3: memref<1x32xf32, #tpu.memory_space<vmem>>, %arg4: memref<64x32xbf16, #tpu.memory_space<vmem>>) attributes {dimension_semantics = [#tpu.dimension_semantics<parallel>], iteration_bounds = array<i64: 2>, scalar_prefetch = 0 : i64, scratch_operands = 0 : i64, tpu.core_type = #tpu.core_type<tc>, window_params = [{transform_indices = @transform_0, window_bounds = array<i64: 64, 256>}, {pipeline_mode = #tpu.pipeline_mode<synchronous>, transform_indices = @transform_1, window_bounds = array<i64: 256, 32>}, {pipeline_mode = #tpu.pipeline_mode<synchronous>, transform_indices = @transform_2, window_bounds = array<i64: 1, 32>}, {transform_indices = @transform_3, window_bounds = array<i64: 64, 32>}]} {
    %c0 = arith.constant 0 : index
    %c0_0 = arith.constant 0 : index
    %0 = vector.load %arg1[%c0, %c0_0] : memref<64x256xbf16, #tpu.memory_space<vmem>>, vector<64x256xbf16>
    %c0_1 = arith.constant 0 : index
    %c0_2 = arith.constant 0 : index
    %1 = vector.load %arg2[%c0_1, %c0_2] : memref<256x32xbf16, #tpu.memory_space<vmem>>, vector<256x32xbf16>
    %cst = arith.constant dense<0.000000e+00> : vector<64x32xf32>
    %2 = tpu.matmul %0, %1, %cst {dimension_numbers = #tpu.dot_dimension_numbers<[1], [0], [0], [1], [0, 0, 1, 1], [], []>} : vector<64x256xbf16>, vector<256x32xbf16>, vector<64x32xf32> -> vector<64x32xf32>
    %c0_3 = arith.constant 0 : index
    %c0_4 = arith.constant 0 : index
    %3 = vector.load %arg3[%c0_3, %c0_4] : memref<1x32xf32, #tpu.memory_space<vmem>>, vector<1x32xf32>
    %4 = vector.broadcast %3 : vector<1x32xf32> to vector<64x32xf32>
    %5 = arith.addf %2, %4 : vector<64x32xf32>
    %cst_5 = arith.constant 0.000000e+00 : f32
    %6 = vector.broadcast %cst_5 : f32 to vector<64x32xf32>
    %7 = arith.maximumf %5, %6 : vector<64x32xf32>
    %8 = arith.truncf %7 : vector<64x32xf32> to vector<64x32xbf16>
    %c0_6 = arith.constant 0 : index
    %c0_7 = arith.constant 0 : index
    %9 = vector.load %arg4[%c0_6, %c0_7] : memref<64x32xbf16, #tpu.memory_space<vmem>>, vector<64x32xbf16>
    tpu.vector_store %arg4[%c0_6, %c0_7], %8 {strides = array<i32>} : memref<64x32xbf16, #tpu.memory_space<vmem>>, vector<64x32xbf16>,
    return
  }
  func.func @transform_0(%arg0: i32) -> (i32, i32) {
    %c0_i32 = arith.constant 0 : i32
    %c0_i32_0 = arith.constant 0 : i32
    return %arg0, %c0_i32 : i32, i32
  }
  func.func @transform_1(%arg0: i32) -> (i32, i32) {
    %c0_i32 = arith.constant 0 : i32
    %c0_i32_0 = arith.constant 0 : i32
    %c0_i32_1 = arith.constant 0 : i32
    return %c0_i32, %c0_i32_0 : i32, i32
  }
  func.func @transform_2(%arg0: i32) -> (i32, i32) {
    %c0_i32 = arith.constant 0 : i32
    %c0_i32_0 = arith.constant 0 : i32
    %c0_i32_1 = arith.constant 0 : i32
    return %c0_i32, %c0_i32_0 : i32, i32
  }
  func.func @transform_3(%arg0: i32) -> (i32, i32) {
    %c0_i32 = arith.constant 0 : i32
    %c0_i32_0 = arith.constant 0 : i32
    return %arg0, %c0_i32 : i32, i32
  }
}

module attributes {stable_mosaic.version = 11 : i64} {
  func.func @kernel(%arg0: i32, %arg1: memref<16x512xbf16, #tpu.memory_space<vmem>>, %arg2: memref<512x64xbf16, #tpu.memory_space<vmem>>, %arg3: memref<1x64xf32, #tpu.memory_space<vmem>>, %arg4: memref<16x64xbf16, #tpu.memory_space<vmem>>) attributes {dimension_semantics = [#tpu.dimension_semantics<parallel>], iteration_bounds = array<i64: 2>, scalar_prefetch = 0 : i64, scratch_operands = 0 : i64, tpu.core_type = #tpu.core_type<tc>, window_params = [{transform_indices = @transform_0, window_bounds = array<i64: 16, 512>}, {pipeline_mode = #tpu.pipeline_mode<synchronous>, transform_indices = @transform_1, window_bounds = array<i64: 512, 64>}, {pipeline_mode = #tpu.pipeline_mode<synchronous>, transform_indices = @transform_2, window_bounds = array<i64: 1, 64>}, {transform_indices = @transform_3, window_bounds = array<i64: 16, 64>}]} {
    %c0 = arith.constant 0 : index
    %c0_0 = arith.constant 0 : index
    %0 = vector.load %arg1[%c0, %c0_0] : memref<16x512xbf16, #tpu.memory_space<vmem>>, vector<16x512xbf16>
    %c0_1 = arith.constant 0 : index
    %c0_2 = arith.constant 0 : index
    %1 = vector.load %arg2[%c0_1, %c0_2] : memref<512x64xbf16, #tpu.memory_space<vmem>>, vector<512x64xbf16>
    %cst = arith.constant dense<0.000000e+00> : vector<16x64xf32>
    %2 = tpu.matmul %0, %1, %cst {dimension_numbers = #tpu.dot_dimension_numbers<[1], [0], [0], [1], [0, 0, 1, 1], [], []>} : vector<16x512xbf16>, vector<512x64xbf16>, vector<16x64xf32> -> vector<16x64xf32>
    %c0_3 = arith.constant 0 : index
    %c0_4 = arith.constant 0 : index
    %3 = vector.load %arg3[%c0_3, %c0_4] : memref<1x64xf32, #tpu.memory_space<vmem>>, vector<1x64xf32>
    %4 = vector.broadcast %3 : vector<1x64xf32> to vector<16x64xf32>
    %5 = arith.addf %2, %4 : vector<16x64xf32>
    %cst_5 = arith.constant 0.000000e+00 : f32
    %6 = vector.broadcast %cst_5 : f32 to vector<16x64xf32>
    %7 = arith.maximumf %5, %6 : vector<16x64xf32>
    %8 = arith.truncf %7 : vector<16x64xf32> to vector<16x64xbf16>
    %c0_6 = arith.constant 0 : index
    %c0_7 = arith.constant 0 : index
    %9 = vector.load %arg4[%c0_6, %c0_7] : memref<16x64xbf16, #tpu.memory_space<vmem>>, vector<16x64xbf16>
    tpu.vector_store %arg4[%c0_6, %c0_7], %8 {strides = array<i32>} : memref<16x64xbf16, #tpu.memory_space<vmem>>, vector<16x64xbf16>,
    return
  }
  func.func @transform_0(%arg0: i32) -> (i32, i32) {
    %c0_i32 = arith.constant 0 : i32
    %c0_i32_0 = arith.constant 0 : i32
    return %arg0, %c0_i32 : i32, i32
  }
  func.func @transform_1(%arg0: i32) -> (i32, i32) {
    %c0_i32 = arith.constant 0 : i32
    %c0_i32_0 = arith.constant 0 : i32
    %c0_i32_1 = arith.constant 0 : i32
    return %c0_i32, %c0_i32_0 : i32, i32
  }
  func.func @transform_2(%arg0: i32) -> (i32, i32) {
    %c0_i32 = arith.constant 0 : i32
    %c0_i32_0 = arith.constant 0 : i32
    %c0_i32_1 = arith.constant 0 : i32
    return %c0_i32, %c0_i32_0 : i32, i32
  }
  func.func @transform_3(%arg0: i32) -> (i32, i32) {
    %c0_i32 = arith.constant 0 : i32
    %c0_i32_0 = arith.constant 0 : i32
    return %arg0, %c0_i32 : i32, i32
  }
}

module attributes {stable_mosaic.version = 11 : i64} {
  func.func @_head_kernel(%arg0: i32, %arg1: memref<2x64xbf16, #tpu.memory_space<vmem>>, %arg2: memref<64x128xbf16, #tpu.memory_space<vmem>>, %arg3: memref<1x128xf32, #tpu.memory_space<vmem>>, %arg4: memref<128x32xbf16, #tpu.memory_space<vmem>>, %arg5: memref<1x32xf32, #tpu.memory_space<vmem>>, %arg6: memref<32x64xbf16, #tpu.memory_space<vmem>>, %arg7: memref<1x64xf32, #tpu.memory_space<vmem>>, %arg8: memref<64x64xbf16, #tpu.memory_space<vmem>>, %arg9: memref<1x64xf32, #tpu.memory_space<vmem>>, %arg10: memref<64x8xbf16, #tpu.memory_space<vmem>>, %arg11: memref<1x8xf32, #tpu.memory_space<vmem>>, %arg12: memref<32x64xbf16, #tpu.memory_space<vmem>>, %arg13: memref<1x64xf32, #tpu.memory_space<vmem>>, %arg14: memref<2x8xf32, #tpu.memory_space<vmem>>, %arg15: memref<2x64xf32, #tpu.memory_space<vmem>>) attributes {dimension_semantics = [#tpu.dimension_semantics<parallel>], iteration_bounds = array<i64: 1>, scalar_prefetch = 0 : i64, scratch_operands = 0 : i64, tpu.core_type = #tpu.core_type<tc>, window_params = [{transform_indices = @transform_0, window_bounds = array<i64: 2, 64>}, {pipeline_mode = #tpu.pipeline_mode<synchronous>, transform_indices = @transform_1, window_bounds = array<i64: 64, 128>}, {pipeline_mode = #tpu.pipeline_mode<synchronous>, transform_indices = @transform_2, window_bounds = array<i64: 1, 128>}, {pipeline_mode = #tpu.pipeline_mode<synchronous>, transform_indices = @transform_3, window_bounds = array<i64: 128, 32>}, {pipeline_mode = #tpu.pipeline_mode<synchronous>, transform_indices = @transform_4, window_bounds = array<i64: 1, 32>}, {pipeline_mode = #tpu.pipeline_mode<synchronous>, transform_indices = @transform_5, window_bounds = array<i64: 32, 64>}, {pipeline_mode = #tpu.pipeline_mode<synchronous>, transform_indices = @transform_6, window_bounds = array<i64: 1, 64>}, {pipeline_mode = #tpu.pipeline_mode<synchronous>, transform_indices = @transform_7, window_bounds = array<i64: 64, 64>}, {pipeline_mode = #tpu.pipeline_mode<synchronous>, transform_indices = @transform_8, window_bounds = array<i64: 1, 64>}, {pipeline_mode = #tpu.pipeline_mode<synchronous>, transform_indices = @transform_9, window_bounds = array<i64: 64, 8>}, {pipeline_mode = #tpu.pipeline_mode<synchronous>, transform_indices = @transform_10, window_bounds = array<i64: 1, 8>}, {pipeline_mode = #tpu.pipeline_mode<synchronous>, transform_indices = @transform_11, window_bounds = array<i64: 32, 64>}, {pipeline_mode = #tpu.pipeline_mode<synchronous>, transform_indices = @transform_12, window_bounds = array<i64: 1, 64>}, {transform_indices = @transform_13, window_bounds = array<i64: 2, 8>}, {transform_indices = @transform_14, window_bounds = array<i64: 2, 64>}]} {
    %c0 = arith.constant 0 : index
    %c0_0 = arith.constant 0 : index
    %0 = vector.load %arg1[%c0, %c0_0] : memref<2x64xbf16, #tpu.memory_space<vmem>>, vector<2x64xbf16>
    %c0_1 = arith.constant 0 : index
    %c0_2 = arith.constant 0 : index
    %1 = vector.load %arg2[%c0_1, %c0_2] : memref<64x128xbf16, #tpu.memory_space<vmem>>, vector<64x128xbf16>
    %cst = arith.constant dense<0.000000e+00> : vector<2x128xf32>
    %2 = tpu.matmul %0, %1, %cst {dimension_numbers = #tpu.dot_dimension_numbers<[1], [0], [0], [1], [0, 0, 1, 1], [], []>} : vector<2x64xbf16>, vector<64x128xbf16>, vector<2x128xf32> -> vector<2x128xf32>
    %c0_3 = arith.constant 0 : index
    %c0_4 = arith.constant 0 : index
    %3 = vector.load %arg3[%c0_3, %c0_4] : memref<1x128xf32, #tpu.memory_space<vmem>>, vector<1x128xf32>
    %4 = vector.broadcast %3 : vector<1x128xf32> to vector<2x128xf32>
    %5 = arith.addf %2, %4 : vector<2x128xf32>
    %cst_5 = arith.constant 0.000000e+00 : f32
    %6 = vector.broadcast %cst_5 : f32 to vector<2x128xf32>
    %7 = arith.maximumf %5, %6 : vector<2x128xf32>
    %8 = arith.truncf %7 : vector<2x128xf32> to vector<2x128xbf16>
    %c0_6 = arith.constant 0 : index
    %c0_7 = arith.constant 0 : index
    %9 = vector.load %arg4[%c0_6, %c0_7] : memref<128x32xbf16, #tpu.memory_space<vmem>>, vector<128x32xbf16>
    %cst_8 = arith.constant dense<0.000000e+00> : vector<2x32xf32>
    %10 = tpu.matmul %8, %9, %cst_8 {dimension_numbers = #tpu.dot_dimension_numbers<[1], [0], [0], [1], [0, 0, 1, 1], [], []>} : vector<2x128xbf16>, vector<128x32xbf16>, vector<2x32xf32> -> vector<2x32xf32>
    %c0_9 = arith.constant 0 : index
    %c0_10 = arith.constant 0 : index
    %11 = vector.load %arg5[%c0_9, %c0_10] : memref<1x32xf32, #tpu.memory_space<vmem>>, vector<1x32xf32>
    %12 = vector.broadcast %11 : vector<1x32xf32> to vector<2x32xf32>
    %13 = arith.addf %10, %12 : vector<2x32xf32>
    %14 = arith.truncf %13 : vector<2x32xf32> to vector<2x32xbf16>
    %c0_11 = arith.constant 0 : index
    %c0_12 = arith.constant 0 : index
    %15 = vector.load %arg6[%c0_11, %c0_12] : memref<32x64xbf16, #tpu.memory_space<vmem>>, vector<32x64xbf16>
    %cst_13 = arith.constant dense<0.000000e+00> : vector<2x64xf32>
    %16 = tpu.matmul %14, %15, %cst_13 {dimension_numbers = #tpu.dot_dimension_numbers<[1], [0], [0], [1], [0, 0, 1, 1], [], []>} : vector<2x32xbf16>, vector<32x64xbf16>, vector<2x64xf32> -> vector<2x64xf32>
    %c0_14 = arith.constant 0 : index
    %c0_15 = arith.constant 0 : index
    %17 = vector.load %arg7[%c0_14, %c0_15] : memref<1x64xf32, #tpu.memory_space<vmem>>, vector<1x64xf32>
    %18 = vector.broadcast %17 : vector<1x64xf32> to vector<2x64xf32>
    %19 = arith.addf %16, %18 : vector<2x64xf32>
    %cst_16 = arith.constant 0.000000e+00 : f32
    %20 = vector.broadcast %cst_16 : f32 to vector<2x64xf32>
    %21 = arith.maximumf %19, %20 : vector<2x64xf32>
    %22 = arith.truncf %21 : vector<2x64xf32> to vector<2x64xbf16>
    %c0_17 = arith.constant 0 : index
    %c0_18 = arith.constant 0 : index
    %23 = vector.load %arg8[%c0_17, %c0_18] : memref<64x64xbf16, #tpu.memory_space<vmem>>, vector<64x64xbf16>
    %cst_19 = arith.constant dense<0.000000e+00> : vector<2x64xf32>
    %24 = tpu.matmul %22, %23, %cst_19 {dimension_numbers = #tpu.dot_dimension_numbers<[1], [0], [0], [1], [0, 0, 1, 1], [], []>} : vector<2x64xbf16>, vector<64x64xbf16>, vector<2x64xf32> -> vector<2x64xf32>
    %c0_20 = arith.constant 0 : index
    %c0_21 = arith.constant 0 : index
    %25 = vector.load %arg9[%c0_20, %c0_21] : memref<1x64xf32, #tpu.memory_space<vmem>>, vector<1x64xf32>
    %26 = vector.broadcast %25 : vector<1x64xf32> to vector<2x64xf32>
    %27 = arith.addf %24, %26 : vector<2x64xf32>
    %cst_22 = arith.constant 0.000000e+00 : f32
    %28 = vector.broadcast %cst_22 : f32 to vector<2x64xf32>
    %29 = arith.maximumf %27, %28 : vector<2x64xf32>
    %30 = arith.truncf %29 : vector<2x64xf32> to vector<2x64xbf16>
    %c0_23 = arith.constant 0 : index
    %c0_24 = arith.constant 0 : index
    %31 = vector.load %arg10[%c0_23, %c0_24] : memref<64x8xbf16, #tpu.memory_space<vmem>>, vector<64x8xbf16>
    %cst_25 = arith.constant dense<0.000000e+00> : vector<2x8xf32>
    %32 = tpu.matmul %30, %31, %cst_25 {dimension_numbers = #tpu.dot_dimension_numbers<[1], [0], [0], [1], [0, 0, 1, 1], [], []>} : vector<2x64xbf16>, vector<64x8xbf16>, vector<2x8xf32> -> vector<2x8xf32>
    %c0_26 = arith.constant 0 : index
    %c0_27 = arith.constant 0 : index
    %33 = vector.load %arg11[%c0_26, %c0_27] : memref<1x8xf32, #tpu.memory_space<vmem>>, vector<1x8xf32>
    %34 = vector.broadcast %33 : vector<1x8xf32> to vector<2x8xf32>
    %35 = arith.addf %32, %34 : vector<2x8xf32>
    %c0_28 = arith.constant 0 : index
    %c0_29 = arith.constant 0 : index
    %36 = vector.load %arg14[%c0_28, %c0_29] : memref<2x8xf32, #tpu.memory_space<vmem>>, vector<2x8xf32>
    tpu.vector_store %arg14[%c0_28, %c0_29], %35 {strides = array<i32>} : memref<2x8xf32, #tpu.memory_space<vmem>>, vector<2x8xf32>,
    %c0_30 = arith.constant 0 : index
    %c0_31 = arith.constant 0 : index
    %37 = vector.load %arg12[%c0_30, %c0_31] : memref<32x64xbf16, #tpu.memory_space<vmem>>, vector<32x64xbf16>
    %cst_32 = arith.constant dense<0.000000e+00> : vector<2x64xf32>
    %38 = tpu.matmul %14, %37, %cst_32 {dimension_numbers = #tpu.dot_dimension_numbers<[1], [0], [0], [1], [0, 0, 1, 1], [], []>} : vector<2x32xbf16>, vector<32x64xbf16>, vector<2x64xf32> -> vector<2x64xf32>
    %c0_33 = arith.constant 0 : index
    %c0_34 = arith.constant 0 : index
    %39 = vector.load %arg13[%c0_33, %c0_34] : memref<1x64xf32, #tpu.memory_space<vmem>>, vector<1x64xf32>
    %40 = vector.broadcast %39 : vector<1x64xf32> to vector<2x64xf32>
    %41 = arith.addf %38, %40 : vector<2x64xf32>
    %c0_35 = arith.constant 0 : index
    %c0_36 = arith.constant 0 : index
    %42 = vector.load %arg15[%c0_35, %c0_36] : memref<2x64xf32, #tpu.memory_space<vmem>>, vector<2x64xf32>
    tpu.vector_store %arg15[%c0_35, %c0_36], %41 {strides = array<i32>} : memref<2x64xf32, #tpu.memory_space<vmem>>, vector<2x64xf32>,
    return
  }
  func.func @transform_0(%arg0: i32) -> (i32, i32) {
    %c0_i32 = arith.constant 0 : i32
    %c0_i32_0 = arith.constant 0 : i32
    return %arg0, %c0_i32 : i32, i32
  }
  func.func @transform_1(%arg0: i32) -> (i32, i32) {
    %c0_i32 = arith.constant 0 : i32
    %c0_i32_0 = arith.constant 0 : i32
    %c0_i32_1 = arith.constant 0 : i32
    return %c0_i32, %c0_i32_0 : i32, i32
  }
  func.func @transform_2(%arg0: i32) -> (i32, i32) {
    %c0_i32 = arith.constant 0 : i32
    %c0_i32_0 = arith.constant 0 : i32
    %c0_i32_1 = arith.constant 0 : i32
    return %c0_i32, %c0_i32_0 : i32, i32
  }
  func.func @transform_3(%arg0: i32) -> (i32, i32) {
    %c0_i32 = arith.constant 0 : i32
    %c0_i32_0 = arith.constant 0 : i32
    %c0_i32_1 = arith.constant 0 : i32
    return %c0_i32, %c0_i32_0 : i32, i32
  }
  func.func @transform_4(%arg0: i32) -> (i32, i32) {
    %c0_i32 = arith.constant 0 : i32
    %c0_i32_0 = arith.constant 0 : i32
    %c0_i32_1 = arith.constant 0 : i32
    return %c0_i32, %c0_i32_0 : i32, i32
  }
  func.func @transform_5(%arg0: i32) -> (i32, i32) {
    %c0_i32 = arith.constant 0 : i32
    %c0_i32_0 = arith.constant 0 : i32
    %c0_i32_1 = arith.constant 0 : i32
    return %c0_i32, %c0_i32_0 : i32, i32
  }
  func.func @transform_6(%arg0: i32) -> (i32, i32) {
    %c0_i32 = arith.constant 0 : i32
    %c0_i32_0 = arith.constant 0 : i32
    %c0_i32_1 = arith.constant 0 : i32
    return %c0_i32, %c0_i32_0 : i32, i32
  }
  func.func @transform_7(%arg0: i32) -> (i32, i32) {
    %c0_i32 = arith.constant 0 : i32
    %c0_i32_0 = arith.constant 0 : i32
    %c0_i32_1 = arith.constant 0 : i32
    return %c0_i32, %c0_i32_0 : i32, i32
  }
  func.func @transform_8(%arg0: i32) -> (i32, i32) {
    %c0_i32 = arith.constant 0 : i32
    %c0_i32_0 = arith.constant 0 : i32
    %c0_i32_1 = arith.constant 0 : i32
    return %c0_i32, %c0_i32_0 : i32, i32
  }
  func.func @transform_9(%arg0: i32) -> (i32, i32) {
    %c0_i32 = arith.constant 0 : i32
    %c0_i32_0 = arith.constant 0 : i32
    %c0_i32_1 = arith.constant 0 : i32
    return %c0_i32, %c0_i32_0 : i32, i32
  }
  func.func @transform_10(%arg0: i32) -> (i32, i32) {
    %c0_i32 = arith.constant 0 : i32
    %c0_i32_0 = arith.constant 0 : i32
    %c0_i32_1 = arith.constant 0 : i32
    return %c0_i32, %c0_i32_0 : i32, i32
  }
  func.func @transform_11(%arg0: i32) -> (i32, i32) {
    %c0_i32 = arith.constant 0 : i32
    %c0_i32_0 = arith.constant 0 : i32
    %c0_i32_1 = arith.constant 0 : i32
    return %c0_i32, %c0_i32_0 : i32, i32
  }
  func.func @transform_12(%arg0: i32) -> (i32, i32) {
    %c0_i32 = arith.constant 0 : i32
    %c0_i32_0 = arith.constant 0 : i32
    %c0_i32_1 = arith.constant 0 : i32
    return %c0_i32, %c0_i32_0 : i32, i32
  }
  func.func @transform_13(%arg0: i32) -> (i32, i32) {
    %c0_i32 = arith.constant 0 : i32
    %c0_i32_0 = arith.constant 0 : i32
    return %arg0, %c0_i32 : i32, i32
  }
  func.func @transform_14(%arg0: i32) -> (i32, i32) {
    %c0_i32 = arith.constant 0 : i32
    %c0_i32_0 = arith.constant 0 : i32
    return %arg0, %c0_i32 : i32, i32
  }
}

module attributes {stable_mosaic.version = 11 : i64} {
  func.func @kernel(%arg0: i32, %arg1: memref<2x576xbf16, #tpu.memory_space<vmem>>, %arg2: memref<576x64xbf16, #tpu.memory_space<vmem>>, %arg3: memref<1x64xf32, #tpu.memory_space<vmem>>, %arg4: memref<2x64xbf16, #tpu.memory_space<vmem>>) attributes {dimension_semantics = [#tpu.dimension_semantics<parallel>], iteration_bounds = array<i64: 1>, scalar_prefetch = 0 : i64, scratch_operands = 0 : i64, tpu.core_type = #tpu.core_type<tc>, window_params = [{transform_indices = @transform_0, window_bounds = array<i64: 2, 576>}, {pipeline_mode = #tpu.pipeline_mode<synchronous>, transform_indices = @transform_1, window_bounds = array<i64: 576, 64>}, {pipeline_mode = #tpu.pipeline_mode<synchronous>, transform_indices = @transform_2, window_bounds = array<i64: 1, 64>}, {transform_indices = @transform_3, window_bounds = array<i64: 2, 64>}]} {
    %c0 = arith.constant 0 : index
    %c0_0 = arith.constant 0 : index
    %0 = vector.load %arg1[%c0, %c0_0] : memref<2x576xbf16, #tpu.memory_space<vmem>>, vector<2x576xbf16>
    %c0_1 = arith.constant 0 : index
    %c0_2 = arith.constant 0 : index
    %1 = vector.load %arg2[%c0_1, %c0_2] : memref<576x64xbf16, #tpu.memory_space<vmem>>, vector<576x64xbf16>
    %cst = arith.constant dense<0.000000e+00> : vector<2x64xf32>
    %2 = tpu.matmul %0, %1, %cst {dimension_numbers = #tpu.dot_dimension_numbers<[1], [0], [0], [1], [0, 0, 1, 1], [], []>} : vector<2x576xbf16>, vector<576x64xbf16>, vector<2x64xf32> -> vector<2x64xf32>
    %c0_3 = arith.constant 0 : index
    %c0_4 = arith.constant 0 : index
    %3 = vector.load %arg3[%c0_3, %c0_4] : memref<1x64xf32, #tpu.memory_space<vmem>>, vector<1x64xf32>
    %4 = vector.broadcast %3 : vector<1x64xf32> to vector<2x64xf32>
    %5 = arith.addf %2, %4 : vector<2x64xf32>
    %cst_5 = arith.constant 0.000000e+00 : f32
    %6 = vector.broadcast %cst_5 : f32 to vector<2x64xf32>
    %7 = arith.maximumf %5, %6 : vector<2x64xf32>
    %8 = arith.truncf %7 : vector<2x64xf32> to vector<2x64xbf16>
    %c0_6 = arith.constant 0 : index
    %c0_7 = arith.constant 0 : index
    %9 = vector.load %arg4[%c0_6, %c0_7] : memref<2x64xbf16, #tpu.memory_space<vmem>>, vector<2x64xbf16>
    tpu.vector_store %arg4[%c0_6, %c0_7], %8 {strides = array<i32>} : memref<2x64xbf16, #tpu.memory_space<vmem>>, vector<2x64xbf16>,
    return
  }
  func.func @transform_0(%arg0: i32) -> (i32, i32) {
    %c0_i32 = arith.constant 0 : i32
    %c0_i32_0 = arith.constant 0 : i32
    return %arg0, %c0_i32 : i32, i32
  }
  func.func @transform_1(%arg0: i32) -> (i32, i32) {
    %c0_i32 = arith.constant 0 : i32
    %c0_i32_0 = arith.constant 0 : i32
    %c0_i32_1 = arith.constant 0 : i32
    return %c0_i32, %c0_i32_0 : i32, i32
  }
  func.func @transform_2(%arg0: i32) -> (i32, i32) {
    %c0_i32 = arith.constant 0 : i32
    %c0_i32_0 = arith.constant 0 : i32
    %c0_i32_1 = arith.constant 0 : i32
    return %c0_i32, %c0_i32_0 : i32, i32
  }
  func.func @transform_3(%arg0: i32) -> (i32, i32) {
    %c0_i32 = arith.constant 0 : i32
    %c0_i32_0 = arith.constant 0 : i32
    return %arg0, %c0_i32 : i32, i32
  }
}

module attributes {stable_mosaic.version = 11 : i64} {
  func.func @kernel(%arg0: i32, %arg1: memref<1x8x1xf32, #tpu.memory_space<vmem>>, %arg2: memref<1x136x1xf32, #tpu.memory_space<vmem>>, %arg3: memref<1x1x64xf32, #tpu.memory_space<vmem>>, %arg4: memref<1x1x8xf32, #tpu.memory_space<vmem>>, %arg5: memref<1x64xf32, #tpu.memory_space<vmem>>, %arg6: memref<64x64xbf16, #tpu.memory_space<vmem>>, %arg7: memref<1x64xf32, #tpu.memory_space<vmem>>, %arg8: memref<64x4xbf16, #tpu.memory_space<vmem>>, %arg9: memref<1x4xf32, #tpu.memory_space<vmem>>, %arg10: memref<8x136xf32, #tpu.memory_space<vmem>>, %arg11: memref<1x4x8xf32, #tpu.memory_space<vmem>>) attributes {dimension_semantics = [#tpu.dimension_semantics<parallel>], iteration_bounds = array<i64: 2>, scalar_prefetch = 0 : i64, scratch_operands = 0 : i64, tpu.core_type = #tpu.core_type<tc>, window_params = [{transform_indices = @transform_0, window_bounds = array<i64: 1, 8, 1>}, {transform_indices = @transform_1, window_bounds = array<i64: 1, 136, 1>}, {transform_indices = @transform_2, window_bounds = array<i64: 1, 1, 64>}, {transform_indices = @transform_3, window_bounds = array<i64: 1, 1, 8>}, {pipeline_mode = #tpu.pipeline_mode<synchronous>, transform_indices = @transform_4, window_bounds = array<i64: 1, 64>}, {pipeline_mode = #tpu.pipeline_mode<synchronous>, transform_indices = @transform_5, window_bounds = array<i64: 64, 64>}, {pipeline_mode = #tpu.pipeline_mode<synchronous>, transform_indices = @transform_6, window_bounds = array<i64: 1, 64>}, {pipeline_mode = #tpu.pipeline_mode<synchronous>, transform_indices = @transform_7, window_bounds = array<i64: 64, 4>}, {pipeline_mode = #tpu.pipeline_mode<synchronous>, transform_indices = @transform_8, window_bounds = array<i64: 1, 4>}, {pipeline_mode = #tpu.pipeline_mode<synchronous>, transform_indices = @transform_9, window_bounds = array<i64: 8, 136>}, {transform_indices = @transform_10, window_bounds = array<i64: 1, 4, 8>}]} {
    %c0 = arith.constant 0 : index
    %c0_0 = arith.constant 0 : index
    %c0_1 = arith.constant 0 : index
    %0 = vector.load %arg1[%c0, %c0_0, %c0_1] : memref<1x8x1xf32, #tpu.memory_space<vmem>>, vector<1x8x1xf32>
    %1 = vector.shape_cast %0 : vector<1x8x1xf32> to vector<8x1xf32>
    %c0_2 = arith.constant 0 : index
    %c0_3 = arith.constant 0 : index
    %c0_4 = arith.constant 0 : index
    %2 = vector.load %arg2[%c0_2, %c0_3, %c0_4] : memref<1x136x1xf32, #tpu.memory_space<vmem>>, vector<1x136x1xf32>
    %3 = vector.shape_cast %2 : vector<1x136x1xf32> to vector<136x1xf32>
    %c0_5 = arith.constant 0 : index
    %c0_6 = arith.constant 0 : index
    %c0_7 = arith.constant 0 : index
    %4 = vector.load %arg3[%c0_5, %c0_6, %c0_7] : memref<1x1x64xf32, #tpu.memory_space<vmem>>, vector<1x1x64xf32>
    %5 = vector.shape_cast %4 : vector<1x1x64xf32> to vector<1x64xf32>
    %c0_8 = arith.constant 0 : index
    %c0_9 = arith.constant 0 : index
    %c0_10 = arith.constant 0 : index
    %6 = vector.load %arg4[%c0_8, %c0_9, %c0_10] : memref<1x1x8xf32, #tpu.memory_space<vmem>>, vector<1x1x8xf32>
    %7 = vector.shape_cast %6 : vector<1x1x8xf32> to vector<1x8xf32>
    %8 = vector.extract_strided_slice %7 {offsets = [0, 0], sizes = [1, 4], strides = [1, 1]} : vector<1x8xf32> to vector<1x4xf32>
    %9 = vector.extract_strided_slice %7 {offsets = [0, 4], sizes = [1, 4], strides = [1, 1]} : vector<1x8xf32> to vector<1x4xf32>
    %10 = math.exp %9 : vector<1x4xf32>
    %c0_11 = arith.constant 0 : index
    %c0_12 = arith.constant 0 : index
    %11 = vector.load %arg5[%c0_11, %c0_12] : memref<1x64xf32, #tpu.memory_space<vmem>>, vector<1x64xf32>
    %12 = vector.broadcast %3 : vector<136x1xf32> to vector<136x64xf32>
    %13 = vector.broadcast %11 : vector<1x64xf32> to vector<136x64xf32>
    %14 = arith.mulf %12, %13 : vector<136x64xf32>
    %15 = vector.broadcast %5 : vector<1x64xf32> to vector<136x64xf32>
    %16 = arith.addf %15, %14 : vector<136x64xf32>
    %cst = arith.constant 0.000000e+00 : f32
    %17 = vector.broadcast %cst : f32 to vector<136x64xf32>
    %18 = arith.maximumf %16, %17 : vector<136x64xf32>
    %19 = arith.truncf %18 : vector<136x64xf32> to vector<136x64xbf16>
    %c0_13 = arith.constant 0 : index
    %c0_14 = arith.constant 0 : index
    %20 = vector.load %arg6[%c0_13, %c0_14] : memref<64x64xbf16, #tpu.memory_space<vmem>>, vector<64x64xbf16>
    %cst_15 = arith.constant dense<0.000000e+00> : vector<136x64xf32>
    %21 = tpu.matmul %19, %20, %cst_15 {dimension_numbers = #tpu.dot_dimension_numbers<[1], [0], [0], [1], [0, 0, 1, 1], [], []>} : vector<136x64xbf16>, vector<64x64xbf16>, vector<136x64xf32> -> vector<136x64xf32>
    %c0_16 = arith.constant 0 : index
    %c0_17 = arith.constant 0 : index
    %22 = vector.load %arg7[%c0_16, %c0_17] : memref<1x64xf32, #tpu.memory_space<vmem>>, vector<1x64xf32>
    %23 = vector.broadcast %22 : vector<1x64xf32> to vector<136x64xf32>
    %24 = arith.addf %21, %23 : vector<136x64xf32>
    %cst_18 = arith.constant 0.000000e+00 : f32
    %25 = vector.broadcast %cst_18 : f32 to vector<136x64xf32>
    %26 = arith.maximumf %24, %25 : vector<136x64xf32>
    %27 = arith.truncf %26 : vector<136x64xf32> to vector<136x64xbf16>
    %c0_19 = arith.constant 0 : index
    %c0_20 = arith.constant 0 : index
    %28 = vector.load %arg8[%c0_19, %c0_20] : memref<64x4xbf16, #tpu.memory_space<vmem>>, vector<64x4xbf16>
    %cst_21 = arith.constant dense<0.000000e+00> : vector<136x4xf32>
    %29 = tpu.matmul %27, %28, %cst_21 {dimension_numbers = #tpu.dot_dimension_numbers<[1], [0], [0], [1], [0, 0, 1, 1], [], []>} : vector<136x64xbf16>, vector<64x4xbf16>, vector<136x4xf32> -> vector<136x4xf32>
    %c0_22 = arith.constant 0 : index
    %c0_23 = arith.constant 0 : index
    %30 = vector.load %arg9[%c0_22, %c0_23] : memref<1x4xf32, #tpu.memory_space<vmem>>, vector<1x4xf32>
    %31 = vector.broadcast %30 : vector<1x4xf32> to vector<136x4xf32>
    %32 = arith.addf %29, %31 : vector<136x4xf32>
    %cst_24 = arith.constant 0.000000e+00 : f32
    %33 = vector.broadcast %cst_24 : f32 to vector<136x4xf32>
    %34 = arith.cmpf ogt, %32, %33 : vector<136x4xf32>
    %cst_25 = arith.constant 0.000000e+00 : f32
    %35 = vector.broadcast %cst_25 : f32 to vector<136x4xf32>
    %36 = arith.minimumf %32, %35 : vector<136x4xf32>
    %37 = math.exp %36 : vector<136x4xf32>
    %cst_26 = arith.constant 1.000000e+00 : f32
    %38 = vector.broadcast %cst_26 : f32 to vector<136x4xf32>
    %39 = arith.subf %37, %38 : vector<136x4xf32>
    %40 = arith.select %34, %32, %39 : vector<136x4xi1>, vector<136x4xf32>
    %cst_27 = arith.constant 1.000000e+00 : f32
    %41 = vector.broadcast %cst_27 : f32 to vector<136x4xf32>
    %42 = arith.addf %40, %41 : vector<136x4xf32>
    %c0_28 = arith.constant 0 : index
    %c0_29 = arith.constant 0 : index
    %43 = vector.load %arg10[%c0_28, %c0_29] : memref<8x136xf32, #tpu.memory_space<vmem>>, vector<8x136xf32>
    %cst_30 = arith.constant dense<0.000000e+00> : vector<8x4xf32>
    %44 = tpu.matmul %43, %42, %cst_30 {dimension_numbers = #tpu.dot_dimension_numbers<[1], [0], [0], [1], [0, 0, 1, 1], [], []>} : vector<8x136xf32>, vector<136x4xf32>, vector<8x4xf32> -> vector<8x4xf32>
    %cst_31 = arith.constant 5.000000e-01 : f32
    %45 = vector.broadcast %cst_31 : f32 to vector<8x1xf32>
    %46 = arith.mulf %1, %45 : vector<8x1xf32>
    %47 = vector.broadcast %46 : vector<8x1xf32> to vector<8x4xf32>
    %48 = arith.mulf %44, %47 : vector<8x4xf32>
    %49 = vector.broadcast %10 : vector<1x4xf32> to vector<8x4xf32>
    %50 = arith.mulf %49, %48 : vector<8x4xf32>
    %51 = vector.broadcast %8 : vector<1x4xf32> to vector<8x4xf32>
    %52 = arith.addf %50, %51 : vector<8x4xf32>
    %cst_32 = arith.constant 0.000000e+00 : f32
    %53 = vector.broadcast %cst_32 : f32 to vector<8x4xf32>
    %54 = arith.subf %53, %52 : vector<8x4xf32>
    %55 = math.exp %54 : vector<8x4xf32>
    %cst_33 = arith.constant 1.000000e+00 : f32
    %56 = vector.broadcast %cst_33 : f32 to vector<8x4xf32>
    %57 = arith.addf %56, %55 : vector<8x4xf32>
    %cst_34 = arith.constant 1.000000e+00 : f32
    %58 = vector.broadcast %cst_34 : f32 to vector<8x4xf32>
    %59 = arith.divf %58, %57 : vector<8x4xf32>
    %60 = tpu.transpose %59, [1, 0] : vector<8x4xf32> -> vector<4x8xf32>
    %c0_35 = arith.constant 0 : index
    %c0_36 = arith.constant 0 : index
    %c0_37 = arith.constant 0 : index
    %61 = vector.load %arg11[%c0_35, %c0_36, %c0_37] : memref<1x4x8xf32, #tpu.memory_space<vmem>>, vector<1x4x8xf32>
    %62 = vector.shape_cast %61 : vector<1x4x8xf32> to vector<4x8xf32>
    %63 = vector.shape_cast %60 : vector<4x8xf32> to vector<1x4x8xf32>
    tpu.vector_store %arg11[%c0_35, %c0_36, %c0_37], %63 {strides = array<i32>} : memref<1x4x8xf32, #tpu.memory_space<vmem>>, vector<1x4x8xf32>,
    return
  }
  func.func @transform_0(%arg0: i32) -> (i32, i32, i32) {
    %c0_i32 = arith.constant 0 : i32
    %c0_i32_0 = arith.constant 0 : i32
    %c0_i32_1 = arith.constant 0 : i32
    return %arg0, %c0_i32, %c0_i32_0 : i32, i32, i32
  }
  func.func @transform_1(%arg0: i32) -> (i32, i32, i32) {
    %c0_i32 = arith.constant 0 : i32
    %c0_i32_0 = arith.constant 0 : i32
    %c0_i32_1 = arith.constant 0 : i32
    return %arg0, %c0_i32, %c0_i32_0 : i32, i32, i32
  }
  func.func @transform_2(%arg0: i32) -> (i32, i32, i32) {
    %c0_i32 = arith.constant 0 : i32
    %c0_i32_0 = arith.constant 0 : i32
    %c0_i32_1 = arith.constant 0 : i32
    return %arg0, %c0_i32, %c0_i32_0 : i32, i32, i32
  }
  func.func @transform_3(%arg0: i32) -> (i32, i32, i32) {
    %c0_i32 = arith.constant 0 : i32
    %c0_i32_0 = arith.constant 0 : i32
    %c0_i32_1 = arith.constant 0 : i32
    return %arg0, %c0_i32, %c0_i32_0 : i32, i32, i32
  }
  func.func @transform_4(%arg0: i32) -> (i32, i32) {
    %c0_i32 = arith.constant 0 : i32
    %c0_i32_0 = arith.constant 0 : i32
    %c0_i32_1 = arith.constant 0 : i32
    return %c0_i32, %c0_i32_0 : i32, i32
  }
  func.func @transform_5(%arg0: i32) -> (i32, i32) {
    %c0_i32 = arith.constant 0 : i32
    %c0_i32_0 = arith.constant 0 : i32
    %c0_i32_1 = arith.constant 0 : i32
    return %c0_i32, %c0_i32_0 : i32, i32
  }
  func.func @transform_6(%arg0: i32) -> (i32, i32) {
    %c0_i32 = arith.constant 0 : i32
    %c0_i32_0 = arith.constant 0 : i32
    %c0_i32_1 = arith.constant 0 : i32
    return %c0_i32, %c0_i32_0 : i32, i32
  }
  func.func @transform_7(%arg0: i32) -> (i32, i32) {
    %c0_i32 = arith.constant 0 : i32
    %c0_i32_0 = arith.constant 0 : i32
    %c0_i32_1 = arith.constant 0 : i32
    return %c0_i32, %c0_i32_0 : i32, i32
  }
  func.func @transform_8(%arg0: i32) -> (i32, i32) {
    %c0_i32 = arith.constant 0 : i32
    %c0_i32_0 = arith.constant 0 : i32
    %c0_i32_1 = arith.constant 0 : i32
    return %c0_i32, %c0_i32_0 : i32, i32
  }
  func.func @transform_9(%arg0: i32) -> (i32, i32) {
    %c0_i32 = arith.constant 0 : i32
    %c0_i32_0 = arith.constant 0 : i32
    %c0_i32_1 = arith.constant 0 : i32
    return %c0_i32, %c0_i32_0 : i32, i32
  }
  func.func @transform_10(%arg0: i32) -> (i32, i32, i32) {
    %c0_i32 = arith.constant 0 : i32
    %c0_i32_0 = arith.constant 0 : i32
    %c0_i32_1 = arith.constant 0 : i32
    return %arg0, %c0_i32, %c0_i32_0 : i32, i32, i32
  }
}

</mosaic_0001>

<bundles_post_ra>
// kernel: _lambda_.5
= control target key start
LH: loop header
LB: loop body
LE: loop exit
PB: predicated region body
PF: predicated region fallthrough
CT: control target
= control target key end

     0   :  { %s705_s12 = smov 0   ;;  %s805_s0 = inlined_call_operand.vmem [shape: bf16[128,256], index: 0, kind: input, shape index: {}]   ;;  %s806_s1 = inlined_call_operand.vmem [shape: bf16[256,32], index: 1, kind: input, shape index: {}]   ;;  %s807_s2 = inlined_call_operand.vmem [shape: f32[1,32], index: 2, kind: input, shape index: {}]   ;;  %s808_s3 = inlined_call_operand.vmem [shape: bf16[128,32], index: 3, kind: output, shape index: {}]  }
   0x1 LB: > { %s531_s13 = sadd.s32 4294967295, %s683_s12   ;;  %p535_p0 = scmp.ge.s32.totalorder %s683_s12, 1  ;;  %s683_s12 = sphi %s705_s12, %s13_s12  }
   0x2   : > { %p139_p1 = scmp.lt.s32.totalorder %s683_s12, 3 }
   0x4   : > { %p140_p2 = pnand %p535_p0, %p139_p1 }
   0x5   : > { %v649_v0 = vld [vmem:[%s806_s1 + $0x40] sm:$0xff] (!%p140_p2)   ;;  %s536_s16 = sshll.u32 (!%p140_p2), %s531_s13, 3  ;;  %v651_v2 = vld [vmem:[%s806_s1 + $0x48] sm:$0xff] (!%p140_p2)   ;;  %v653_v4 = vld [vmem:[%s806_s1 + $0x50] sm:$0xff] (!%p140_p2)   ;;  %vm466_vm0 = vcmask (!%p140_p2), 257024  }
   0x6   : > { %143 = sbr.rel (%p140_p2) target bundleno = 270 (0x10e), region = 32  ;;  %v650_v1 = vld [vmem:[%s806_s1] sm:$0xff] (!%p140_p2)   ;;  %585 = vmatprep.subr.bf16.mxu0 (!%p140_p2), %v649_v0  ;;  %625 = vmatprep.subr.bf16.mxu1 (!%p140_p2), %v649_v0  ;;  %v652_v3 = vld [vmem:[%s806_s1 + $0x8] sm:$0xff] (!%p140_p2)   ;;  %p165_p3 = scmp.lt.s32.totalorder (!%p140_p2), %s536_s16, 15  ;;  %v654_v5 = vld [vmem:[%s806_s1 + $0x10] sm:$0xff] (!%p140_p2)  }
   0x7   : > { %586 = vmatpush3.bf16.msra.mxu0 (!%p140_p2), %v650_v1  ;;  %633 = vmatpush3.bf16.msra.mxu1 (!%p140_p2), %v650_v1  ;;  %v655_v6 = vld [vmem:[%s806_s1 + $0x58] sm:$0xff] (!%p140_p2)   ;;  %v657_v8 = vld [vmem:[%s806_s1 + $0x60] sm:$0xff] (!%p140_p2)   ;;  %v659_v10 = vld [vmem:[%s806_s1 + $0x68] sm:$0xff] (!%p140_p2)  }
   0x8   : > { %587 = vmatprep.subr.bf16.mxu0 (!%p140_p2), %v651_v2  ;;  %626 = vmatprep.subr.bf16.mxu1 (!%p140_p2), %v651_v2  ;;  %v656_v7 = vld [vmem:[%s806_s1 + $0x18] sm:$0xff] (!%p140_p2)   ;;  %v658_v9 = vld [vmem:[%s806_s1 + $0x20] sm:$0xff] (!%p140_p2)   ;;  %v660_v13 = vld [vmem:[%s806_s1 + $0x28] sm:$0xff] (!%p140_p2)  }
   0x9   : > { %v661_v14 = vld [vmem:[%s806_s1 + $0x70] sm:$0xff] (!%p140_p2)   ;;  %v663_v16 = vld [vmem:[%s806_s1 + $0x78] sm:$0xff] (!%p140_p2)   ;;  %v541_v26 = vld [vmem:[%s807_s2] ss:$0 sm:$0xff] (!%p140_p2) }
   0xa   : > { %v662_v15 = vld [vmem:[%s806_s1 + $0x30] sm:$0xff] (!%p140_p2)   ;;  %v664_v17 = vld [vmem:[%s806_s1 + $0x38] sm:$0xff] (!%p140_p2)  }
   0xb   : > { %588 = vmatpush3.bf16.msra.mxu0 (!%p140_p2), %v652_v3  ;;  %634 = vmatpush3.bf16.msra.mxu1 (!%p140_p2), %v652_v3 }
   0xc   : > { %589 = vmatprep.subr.bf16.mxu0 (!%p140_p2), %v653_v4  ;;  %627 = vmatprep.subr.bf16.mxu1 (!%p140_p2), %v653_v4 }
   0xd   : > { %s810_s16 = smov (!%p165_p3, %s536_s16), 15 }
   0xe   : > { %s576_s4 = sshll.u32 %s810_s16, 3  ;;  %s540_s28 = sshll.u32 %s810_s16, 2 }
   0xf   : > { %590 = vmatpush3.bf16.msra.mxu0 %v654_v5  ;;  %635 = vmatpush3.bf16.msra.mxu1 %v654_v5  ;;  %s746_s9 = scalar_lea.vmem %s805_s0, %s576_s4  ;;  %s784_s4 = scalar_lea.vmem %s808_s3, %s540_s28 }
  0x10   : > { %591 = vmatprep.subr.bf16.mxu0 %v655_v6  ;;  %628 = vmatprep.subr.bf16.mxu1 %v655_v6  ;;  %v667_v11 = vld [vmem:[%s746_s9 + $0x4] ss:$8 sps:$4 sm:$0xff]   ;;  %v665_v18 = vld [vmem:[%s746_s9] ss:$8 sps:$4 sm:$0xff]   ;;  %v671_v20 = vld [vmem:[%s746_s9 + $0x14] ss:$8 sps:$4 sm:$0xff]  }
  0x11   : > { %v670_v12 = vld [vmem:[%s746_s9 + $0x24] ss:$8 sps:$4 sm:$0xff]   ;;  %393 = vmatprep.mubr.bf16.mxu0 %v667_v11  ;;  %v668_v19 = vld [vmem:[%s746_s9 + $0x20] ss:$8 sps:$4 sm:$0xff]   ;;  %v673_v21 = vld [vmem:[%s746_s9 + $0x34] ss:$8 sps:$4 sm:$0xff]  }
  0x12   : > { %409 = vmatprep.mubr.bf16.mxu1 %v670_v12  ;;  %v675_v22 = vld [vmem:[%s746_s9 + $0x10] ss:$8 sps:$4 sm:$0xff]  }
  0x13   : > { %592 = vmatpush3.bf16.msra.mxu0 %v656_v7  ;;  %636 = vmatpush3.bf16.msra.mxu1 %v656_v7  ;;  %v676_v23 = vld [vmem:[%s746_s9 + $0x30] ss:$8 sps:$4 sm:$0xff]  }
  0x14   : > { %593 = vmatprep.subr.bf16.mxu0 %v657_v8  ;;  %629 = vmatprep.subr.bf16.mxu1 %v657_v8 }
  0x17   : > { %594 = vmatpush3.bf16.msra.mxu0 %v658_v9  ;;  %637 = vmatpush3.bf16.msra.mxu1 %v658_v9 }
  0x18   : > { %595 = vmatprep.subr.bf16.mxu0 %v659_v10  ;;  %630 = vmatprep.subr.bf16.mxu1 %v659_v10 }
  0x1b   : > { %596 = vmatpush3.bf16.msra.mxu0 %v660_v13  ;;  %638 = vmatpush3.bf16.msra.mxu1 %v660_v13 }
  0x1c   : > { %597 = vmatprep.subr.bf16.mxu0 %v661_v14  ;;  %631 = vmatprep.subr.bf16.mxu1 %v661_v14 }
  0x1f   : > { %598 = vmatpush3.bf16.msra.mxu0 %v662_v15  ;;  %639 = vmatpush3.bf16.msra.mxu1 %v662_v15 }
  0x20   : > { %599 = vmatprep.subr.bf16.mxu0 %v663_v16  ;;  %632 = vmatprep.subr.bf16.mxu1 %v663_v16 }
  0x23   : > { %600 = vmatpush3.bf16.msra.mxu0 %v664_v17  ;;  %640 = vmatpush3.bf16.msra.mxu1 %v664_v17 }
  0x26   : > { %394 = vmatmul.mubr.bf16.vlgmr.msra.gmra.mrb[0].mxu0 %v665_v18  ;;  %410 = vmatmul.mubr.bf16.vlgmr.msra.gmra.mrb[0].mxu1 %v668_v19 }
  0x27   : > { %401 = vmatprep.mubr.bf16.mxu0 %v671_v20  ;;  %417 = vmatprep.mubr.bf16.mxu1 %v673_v21 }
  0x2e   : > { %402 = vmatmul.mubr.bf16.gmra.mrb[4].mxu0 %v675_v22  ;;  %418 = vmatmul.mubr.bf16.gmra.mrb[4].mxu1 %v676_v23 }
  0xf9   : > { %v601_v24 = vpop.f32.mrb[0].mxu0  ;;  %v613_v25 = vpop.f32.mrb[0].mxu1 }
  0xfa   : > { %v602_v27 = vpop.f32.mrb[1].mxu0  ;;  %v614_v28 = vpop.f32.mrb[1].mxu1 }
  0xfb   : > { %v603_v29 = vadd.f32 %v602_v27, %v601_v24  ;;  %v615_v30 = vadd.f32 %v614_v28, %v613_v25  ;;  %v604_v31 = vpop.f32.mrb[2].mxu0  ;;  %v616_v32 = vpop.f32.mrb[2].mxu1 }
  0xfc   : > { %v605_v33 = vpop.f32.mrb[3].mxu0  ;;  %v617_v34 = vpop.f32.mrb[3].mxu1 }
  0xfd   : > { %v396_v35 = vadd.f32 %v603_v29, %v541_v26  ;;  %v412_v36 = vadd.f32 %v615_v30, %v541_v26  ;;  %v606_v37 = vadd.f32 %v605_v33, %v604_v31  ;;  %v618_v38 = vadd.f32 %v617_v34, %v616_v32 }
  0xff   : > { %v426_v39 = vmax.f32 %v396_v35, 0.0  ;;  %v430_v40 = vmax.f32 %v412_v36, 0.0  ;;  %v399_v41 = vadd.f32 %v606_v37, %v541_v26  ;;  %v415_v42 = vadd.f32 %v618_v38, %v541_v26 }
 0x101   : > { %v577_v43 = vpack.c.bf16 %v426_v39, %v426_v39  ;;  %v581_v44 = vpack.c.bf16 %v430_v40, %v430_v40  ;;  %v427_v45 = vmax.f32 %v399_v41, 0.0  ;;  %v431_v46 = vmax.f32 %v415_v42, 0.0  ;;  %v607_v47 = vpop.f32.mrb[4].mxu0  ;;  %v619_v48 = vpop.f32.mrb[4].mxu1 }
 0x102   : > { %v608_v49 = vpop.f32.mrb[5].mxu0  ;;  %v620_v50 = vpop.f32.mrb[5].mxu1 }
 0x103   : > { %467 = vst.msk [vmem:[%s784_s4] sm:$0xf] %vm466_vm0, %v577_v43  ;;  %471 = vst.msk [vmem:[%s784_s4 + $0x10] sm:$0xf] %vm466_vm0, %v581_v44  ;;  %v578_v51 = vpack.c.bf16 %v427_v45, %v427_v45  ;;  %v582_v52 = vpack.c.bf16 %v431_v46, %v431_v46  ;;  %v609_v53 = vadd.f32 %v608_v49, %v607_v47  ;;  %v610_v55 = vpop.f32.mrb[6].mxu0  ;;  %v622_v56 = vpop.f32.mrb[6].mxu1 }
 0x104   : > { %v621_v54 = vadd.f32 %v620_v50, %v619_v48  ;;  %v611_v57 = vpop.f32.mrb[7].mxu0  ;;  %v623_v58 = vpop.f32.mrb[7].mxu1 }
 0x105   : > { %468 = vst.msk [vmem:[%s784_s4 + $0x4] sm:$0xf] %vm466_vm0, %v578_v51  ;;  %472 = vst.msk [vmem:[%s784_s4 + $0x14] sm:$0xf] %vm466_vm0, %v582_v52  ;;  %v404_v59 = vadd.f32 %v609_v53, %v541_v26  ;;  %v612_v61 = vadd.f32 %v611_v57, %v610_v55  ;;  %v624_v62 = vadd.f32 %v623_v58, %v622_v56 }
 0x106   : > { %v420_v60 = vadd.f32 %v621_v54, %v541_v26 }
 0x107   : > { %v428_v63 = vmax.f32 %v404_v59, 0.0  ;;  %v407_v1 = vadd.f32 %v612_v61, %v541_v26  ;;  %v423_v2 = vadd.f32 %v624_v62, %v541_v26 }
 0x108   : > { %v432_v0 = vmax.f32 %v420_v60, 0.0 }
 0x109   : > { %v579_v3 = vpack.c.bf16 %v428_v63, %v428_v63  ;;  %v429_v5 = vmax.f32 %v407_v1, 0.0  ;;  %v433_v6 = vmax.f32 %v423_v2, 0.0 }
 0x10a   : > { %v583_v4 = vpack.c.bf16 %v432_v0, %v432_v0 }
 0x10b   : > { %469 = vst.msk [vmem:[%s784_s4 + $0x8] sm:$0xf] %vm466_vm0, %v579_v3  ;;  %v580_v7 = vpack.c.bf16 %v429_v5, %v429_v5  ;;  %v584_v8 = vpack.c.bf16 %v433_v6, %v433_v6 }
 0x10c   : > { %473 = vst.msk [vmem:[%s784_s4 + $0x18] sm:$0xf] %vm466_vm0, %v583_v4 }
 0x10d   : > { %470 = vst.msk [vmem:[%s784_s4 + $0xc] sm:$0xf] %vm466_vm0, %v580_v7  ;;  %474 = vst.msk [vmem:[%s784_s4 + $0x1c] sm:$0xf] %vm466_vm0, %v584_v8 }
 0x10e PF: > { %s13_s12 = sadd.s32 1, %s683_s12  }
 0x10f   : > { %p10_p4 = scmp.ge.s32.totalorder %s13_s12, 4  }
 0x111   :  { %12 = sbr.rel (!%p10_p4) target bundleno = 1 (0x1), region = 62 }

// kernel: _lambda_.6
= control target key start
LH: loop header
LB: loop body
LE: loop exit
PB: predicated region body
PF: predicated region fallthrough
CT: control target
= control target key end

     0   :  { %s788_s12 = smov 0   ;;  %s910_s0 = inlined_call_operand.vmem [shape: bf16[32,512], index: 0, kind: input, shape index: {}]   ;;  %s911_s1 = inlined_call_operand.vmem [shape: bf16[512,64], index: 1, kind: input, shape index: {}]   ;;  %s912_s2 = inlined_call_operand.vmem [shape: f32[1,64], index: 2, kind: input, shape index: {}]   ;;  %s913_s3 = inlined_call_operand.vmem [shape: bf16[32,64], index: 3, kind: output, shape index: {}]  }
   0x1 LB: > { %s616_s13 = sadd.s32 4294967295, %s766_s12   ;;  %p620_p0 = scmp.ge.s32.totalorder %s766_s12, 1  ;;  %s766_s12 = sphi %s788_s12, %s13_s12  }
   0x2   : > { %p139_p1 = scmp.lt.s32.totalorder %s766_s12, 3 }
   0x4   : > { %p140_p2 = pnand %p620_p0, %p139_p1 }
   0x5   : > { %v722_v0 = vld [vmem:[%s911_s1 + $0x40] sm:$0xff] (!%p140_p2)   ;;  %v726_v4 = vld [vmem:[%s911_s1 + $0x48] sm:$0xff] (!%p140_p2)   ;;  %v730_v8 = vld [vmem:[%s911_s1 + $0x50] sm:$0xff] (!%p140_p2)   ;;  %s621_s21 = sshll.u32 (!%p140_p2), %s616_s13, 1  ;;  %vm557_vm0 = vcmask (!%p140_p2), 519168  }
   0x6   : > { %143 = sbr.rel (%p140_p2) target bundleno = 265 (0x109), region = 32  ;;  %v723_v1 = vld [vmem:[%s911_s1 + $0xc0] sm:$0xff] (!%p140_p2)   ;;  %670 = vmatprep.subr.bf16.mxu0 (!%p140_p2), %v722_v0  ;;  %v727_v5 = vld [vmem:[%s911_s1 + $0xc8] sm:$0xff] (!%p140_p2)   ;;  %v731_v9 = vld [vmem:[%s911_s1 + $0xd0] sm:$0xff] (!%p140_p2)   ;;  %p165_p3 = scmp.lt.s32.totalorder (!%p140_p2), %s621_s21, 3 }
   0x7   : > { %v724_v2 = vld [vmem:[%s911_s1] sm:$0xff] (!%p140_p2)   ;;  %692 = vmatprep.subr.bf16.mxu1 (!%p140_p2), %v723_v1  ;;  %v728_v6 = vld [vmem:[%s911_s1 + $0x8] sm:$0xff] (!%p140_p2)   ;;  %v732_v10 = vld [vmem:[%s911_s1 + $0x10] sm:$0xff] (!%p140_p2)  }
   0x8   : > { %v725_v3 = vld [vmem:[%s911_s1 + $0x80] sm:$0xff] (!%p140_p2)   ;;  %671 = vmatpush3.bf16.msra.mxu0 (!%p140_p2), %v724_v2  ;;  %v729_v7 = vld [vmem:[%s911_s1 + $0x88] sm:$0xff] (!%p140_p2)   ;;  %v733_v11 = vld [vmem:[%s911_s1 + $0x90] sm:$0xff] (!%p140_p2)  }
   0x9   : > { %693 = vmatpush3.bf16.msra.mxu1 (!%p140_p2), %v725_v3  ;;  %672 = vmatprep.subr.bf16.mxu0 (!%p140_p2), %v726_v4  ;;  %v734_v12 = vld [vmem:[%s911_s1 + $0x58] sm:$0xff] (!%p140_p2)   ;;  %v738_v16 = vld [vmem:[%s911_s1 + $0x60] sm:$0xff] (!%p140_p2)   ;;  %v742_v20 = vld [vmem:[%s911_s1 + $0x68] sm:$0xff] (!%p140_p2)  }
   0xa   : > { %694 = vmatprep.subr.bf16.mxu1 (!%p140_p2), %v727_v5  ;;  %v735_v13 = vld [vmem:[%s911_s1 + $0xd8] sm:$0xff] (!%p140_p2)   ;;  %v739_v17 = vld [vmem:[%s911_s1 + $0xe0] sm:$0xff] (!%p140_p2)   ;;  %v743_v21 = vld [vmem:[%s911_s1 + $0xe8] sm:$0xff] (!%p140_p2)  }
   0xb   : > { %v736_v14 = vld [vmem:[%s911_s1 + $0x18] sm:$0xff] (!%p140_p2)   ;;  %v740_v18 = vld [vmem:[%s911_s1 + $0x20] sm:$0xff] (!%p140_p2)   ;;  %v744_v22 = vld [vmem:[%s911_s1 + $0x28] sm:$0xff] (!%p140_p2)  }
   0xc   : > { %673 = vmatpush3.bf16.msra.mxu0 (!%p140_p2), %v728_v6  ;;  %v737_v15 = vld [vmem:[%s911_s1 + $0x98] sm:$0xff] (!%p140_p2)   ;;  %v741_v19 = vld [vmem:[%s911_s1 + $0xa0] sm:$0xff] (!%p140_p2)   ;;  %v745_v23 = vld [vmem:[%s911_s1 + $0xa8] sm:$0xff] (!%p140_p2)  }
   0xd   : > { %695 = vmatpush3.bf16.msra.mxu1 %v729_v7  ;;  %674 = vmatprep.subr.bf16.mxu0 %v730_v8  ;;  %s915_s21 = smov (!%p165_p3, %s621_s21), 3  ;;  %v746_v24 = vld [vmem:[%s911_s1 + $0x70] sm:$0xff]   ;;  %v750_v28 = vld [vmem:[%s911_s1 + $0x78] sm:$0xff]   ;;  %v626_v38 = vld [vmem:[%s912_s2] ss:$0 sm:$0xff] }
   0xe   : > { %696 = vmatprep.subr.bf16.mxu1 %v731_v9  ;;  %v747_v25 = vld [vmem:[%s911_s1 + $0xf0] sm:$0xff]   ;;  %s667_s18 = sshll.u32 %s915_s21, 4  ;;  %v751_v29 = vld [vmem:[%s911_s1 + $0xf8] sm:$0xff]   ;;  %s625_s7 = sshll.u32 %s915_s21, 2 }
   0xf   : > { %v748_v26 = vld [vmem:[%s911_s1 + $0x30] sm:$0xff]   ;;  %s169_s28 = scalar_lea.vmem %s910_s0, %s667_s18  ;;  %v752_v30 = vld [vmem:[%s911_s1 + $0x38] sm:$0xff]   ;;  %s175_s10 = scalar_lea.vmem %s913_s3, %s625_s7 }
  0x10   : > { %675 = vmatpush3.bf16.msra.mxu0 %v732_v10  ;;  %v749_v27 = vld [vmem:[%s911_s1 + $0xb0] sm:$0xff]   ;;  %v753_v31 = vld [vmem:[%s911_s1 + $0xb8] sm:$0xff]  }
  0x11   : > { %697 = vmatpush3.bf16.msra.mxu1 %v733_v11  ;;  %676 = vmatprep.subr.bf16.mxu0 %v734_v12  ;;  %v754_v32 = vld [vmem:[%s169_s28] ss:$16 sps:$4 sm:$0xff]   ;;  %v756_v33 = vld [vmem:[%s169_s28 + $0x4] ss:$16 sps:$4 sm:$0xff]   ;;  %v757_v34 = vld [vmem:[%s169_s28 + $0x8] ss:$16 sps:$4 sm:$0xff]  }
  0x12   : > { %698 = vmatprep.subr.bf16.mxu1 %v735_v13  ;;  %v759_v35 = vld [vmem:[%s169_s28 + $0xc] ss:$16 sps:$4 sm:$0xff]   ;;  %497 = vmatprep.mubr.bf16.mxu0 %v756_v33 }
  0x13   : > { %538 = vmatprep.mubr.bf16.mxu1 %v759_v35 }
  0x14   : > { %677 = vmatpush3.bf16.msra.mxu0 %v736_v14 }
  0x15   : > { %699 = vmatpush3.bf16.msra.mxu1 %v737_v15  ;;  %678 = vmatprep.subr.bf16.mxu0 %v738_v16 }
  0x16   : > { %700 = vmatprep.subr.bf16.mxu1 %v739_v17 }
  0x18   : > { %679 = vmatpush3.bf16.msra.mxu0 %v740_v18 }
  0x19   : > { %701 = vmatpush3.bf16.msra.mxu1 %v741_v19  ;;  %680 = vmatprep.subr.bf16.mxu0 %v742_v20 }
  0x1a   : > { %702 = vmatprep.subr.bf16.mxu1 %v743_v21 }
  0x1c   : > { %681 = vmatpush3.bf16.msra.mxu0 %v744_v22 }
  0x1d   : > { %703 = vmatpush3.bf16.msra.mxu1 %v745_v23  ;;  %682 = vmatprep.subr.bf16.mxu0 %v746_v24 }
  0x1e   : > { %704 = vmatprep.subr.bf16.mxu1 %v747_v25 }
  0x20   : > { %683 = vmatpush3.bf16.msra.mxu0 %v748_v26 }
  0x21   : > { %705 = vmatpush3.bf16.msra.mxu1 %v749_v27  ;;  %684 = vmatprep.subr.bf16.mxu0 %v750_v28 }
  0x22   : > { %706 = vmatprep.subr.bf16.mxu1 %v751_v29 }
  0x24   : > { %685 = vmatpush3.bf16.msra.mxu0 %v752_v30 }
  0x25   : > { %707 = vmatpush3.bf16.msra.mxu1 %v753_v31 }
  0x27   : > { %498 = vmatmul.mubr.bf16.vlgmr.msra.gmra.mrb[0].mxu0 %v754_v32 }
  0x28   : > { %539 = vmatmul.mubr.bf16.vlgmr.msra.gmra.mrb[0].mxu1 %v757_v34 }
  0xfa   : > { %v686_v36 = vpop.f32.mrb[0].mxu0 }
  0xfb   : > { %v708_v37 = vpop.f32.mrb[0].mxu1  ;;  %v687_v39 = vpop.f32.mrb[1].mxu0 }
  0xfc   : > { %v688_v40 = vadd.f32 %v687_v39, %v686_v36  ;;  %v709_v41 = vpop.f32.mrb[1].mxu1  ;;  %v689_v42 = vpop.f32.mrb[2].mxu0 }
  0xfd   : > { %v710_v43 = vadd.f32 %v709_v41, %v708_v37  ;;  %v711_v44 = vpop.f32.mrb[2].mxu1  ;;  %v690_v45 = vpop.f32.mrb[3].mxu0 }
  0xfe   : > { %v500_v46 = vadd.f32 %v688_v40, %v626_v38  ;;  %v691_v47 = vadd.f32 %v690_v45, %v689_v42  ;;  %v712_v48 = vpop.f32.mrb[3].mxu1 }
  0xff   : > { %v713_v49 = vadd.f32 %v712_v48, %v711_v44 }
 0x100   : > { %v541_v50 = vadd.f32 %v710_v43, %v500_v46  ;;  %v503_v51 = vadd.f32 %v691_v47, %v626_v38 }
 0x102   : > { %v547_v52 = vmax.f32 %v541_v50, 0.0  ;;  %v544_v53 = vadd.f32 %v713_v49, %v503_v51 }
 0x104   : > { %v668_v54 = vpack.c.bf16 %v547_v52, %v547_v52  ;;  %v548_v55 = vmax.f32 %v544_v53, 0.0 }
 0x106   : > { %558 = vst.msk [vmem:[%s175_s10] sm:$0xf] %vm557_vm0, %v668_v54  ;;  %v669_v56 = vpack.c.bf16 %v548_v55, %v548_v55 }
 0x108   : > { %559 = vst.msk [vmem:[%s175_s10 + $0x4] sm:$0xf] %vm557_vm0, %v669_v56 }
 0x109 PF: > { %s13_s12 = sadd.s32 1, %s766_s12  }
 0x10a   : > { %p10_p4 = scmp.ge.s32.totalorder %s13_s12, 4  }
 0x10c   :  { %12 = sbr.rel (!%p10_p4) target bundleno = 1 (0x1), region = 62 }

// kernel: mul.11
= control target key start
LH: loop header
LB: loop body
LE: loop exit
PB: predicated region body
PF: predicated region fallthrough
CT: control target
= control target key end

     0   :  { %vm7_vm0 = vcmask 64512   ;;  %s39_s0 = inlined_call_operand.vmem [shape: f32[16], index: 0, kind: input, shape index: {}]   ;;  %s40_s1 = inlined_call_operand.vmem [shape: f32[2,8], index: 1, kind: output, shape index: {}]  }
   0x1   :  { %v4_v0 = vld [vmem:[%s39_s0] sm:$0x1]  ;;  %s22_s0 = smov 120  }
   0x2   :  { %5 = vst [vmem:[#allocation1] sm:$0x1] %v4_v0 }
   0x9   :  { %v9_v1 = vld [vmem:[#allocation1] sm:$0x1]  }
   0xa   :  { %v6_v2 = vld [vmem:[#allocation1] sm:$0x1]   ;;  %10 = vrot.lane.b32.xlu0 %v9_v1, %s22_s0 }
   0xb   :  { %8 = vst.msk [vmem:[#allocation0] sm:$0x1] %vm7_vm0, %v6_v2  }
  0x7c   :  { %v11_v3 = vpop.permute.xlu0 %10  }
  0x7d   :  { %14 = vst.msk [vmem:[#allocation0 + $0x1] sm:$0x1] %vm7_vm0, %v11_v3  }
  0x84   :  { %v18_v4 = vld [vmem:[#allocation0] sm:$0x3] }
  0x85   :  { %20 = vst [vmem:[%s40_s1] sm:$0x3] %v18_v4 }

// kernel: _lambda_.8
= control target key start
LH: loop header
LB: loop body
LE: loop exit
PB: predicated region body
PF: predicated region fallthrough
CT: control target
= control target key end

     0   :  { %v718_v0 = vmov 0.0   ;;  %vm719_vm0 = vmmov 0   ;;  %vm87_vm1 = vcmask 523264   ;;  %vm268_vm2 = vcmask 261120   ;;  %s935_s1 = inlined_call_operand.vmem [shape: bf16[64,128], index: 1, kind: input, shape index: {}]   ;;  %s936_s3 = inlined_call_operand.vmem [shape: bf16[128,32], index: 3, kind: input, shape index: {}]   ;;  %s937_s0 = inlined_call_operand.vmem [shape: bf16[2,64], index: 0, kind: input, shape index: {}]   ;;  %s938_s5 = inlined_call_operand.vmem [shape: bf16[32,64], index: 5, kind: input, shape index: {}]   ;;  %s939_s2 = inlined_call_operand.vmem [shape: f32[1,128], index: 2, kind: input, shape index: {}]   ;;  %s940_s7 = inlined_call_operand.vmem [shape: bf16[64,64], index: 7, kind: input, shape index: {}]   ;;  %s941_s4 = inlined_call_operand.vmem [shape: f32[1,32], index: 4, kind: input, shape index: {}]   ;;  %s942_s11 = inlined_call_operand.vmem [shape: bf16[32,64], index: 11, kind: input, shape index: {}]   ;;  %s943_s9 = inlined_call_operand.vmem [shape: bf16[64,8], index: 9, kind: input, shape index: {}]   ;;  %s944_s6 = inlined_call_operand.vmem [shape: f32[1,64], index: 6, kind: input, shape index: {}]   ;;  %s945_s8 = inlined_call_operand.vmem [shape: f32[1,64], index: 8, kind: input, shape index: {}]   ;;  %s946_s12 = inlined_call_operand.vmem [shape: f32[1,64], index: 12, kind: input, shape index: {}]   ;;  %s947_s14 = inlined_call_operand.vmem [shape: f32[2,64], index: 14, kind: output, shape index: {1}]   ;;  %s948_s10 = inlined_call_operand.vmem [shape: f32[1,8], index: 10, kind: input, shape index: {}]   ;;  %s949_s13 = inlined_call_operand.vmem [shape: f32[2,8], index: 13, kind: output, shape index: {0}]  }
   0x1   :  { %620 = vmatprep.subr.bf16.mxu0 %v718_v0  ;;  %v694_v1 = vld [vmem:[%s935_s1] sm:$0xff]   ;;  %628 = vmatprep.mubr.msk.bf16.mxu0 %vm719_vm0, %v718_v0  ;;  %v695_v2 = vld [vmem:[%s935_s1 + $0x8] sm:$0xff]   ;;  %v696_v4 = vld [vmem:[%s935_s1 + $0x10] sm:$0xff]   ;;  %vm545_vm3 = vcmask 517120   ;;  %vm480_vm4 = vcmask 58368  }
   0x2   :  { %632 = vmatprep.subr.bf16.mxu1 %v718_v0  ;;  %648 = vmatprep.mubr.msk.bf16.mxu1 %vm719_vm0, %v718_v0  ;;  %v698_v3 = vld [vmem:[%s936_s3] sm:$0xff]   ;;  %v699_v5 = vld [vmem:[%s936_s3 + $0x8] sm:$0xff]   ;;  %v697_v6 = vld [vmem:[%s935_s1 + $0x18] sm:$0xff]  }
   0x3   :  { %621 = vmatpush3.bf16.msra.mxu0 %v694_v1  ;;  %633 = vmatpush3.bf16.msra.mxu1 %v698_v3  ;;  %v700_v7 = vld [vmem:[%s936_s3 + $0x10] sm:$0xff]   ;;  %v47_v8 = vld [vmem:[%s937_s0] sm:$0x1]  ;;  %v701_v9 = vld [vmem:[%s936_s3 + $0x18] sm:$0xff]  }
   0x4   :  { %622 = vmatprep.subr.bf16.mxu0 %v718_v0  ;;  %634 = vmatprep.subr.bf16.mxu1 %v718_v0  ;;  %v702_v10 = vld [vmem:[%s936_s3 + $0x20] sm:$0xff]   ;;  %v703_v11 = vld [vmem:[%s936_s3 + $0x28] sm:$0xff]   ;;  %v704_v12 = vld [vmem:[%s936_s3 + $0x30] sm:$0xff]  }
   0x5   :  { %v705_v13 = vld [vmem:[%s936_s3 + $0x38] sm:$0xff]   ;;  %v706_v14 = vld [vmem:[%s938_s5] sm:$0xff]   ;;  %v707_v23 = vld [vmem:[%s938_s5 + $0x8] sm:$0xff]  }
   0x6   :  { %v555_v15 = vld [vmem:[%s939_s2] ss:$0 sm:$0xff]  ;;  %v709_v32 = vld [vmem:[%s940_s7 + $0x8] sm:$0xff]   ;;  %v710_v33 = vld [vmem:[%s940_s7 + $0x10] sm:$0xff]  }
   0x7   :  { %623 = vmatpush3.bf16.msra.mxu0 %v695_v2  ;;  %635 = vmatpush3.bf16.msra.mxu1 %v699_v5  ;;  %v561_v24 = vld [vmem:[%s941_s4] ss:$0 sm:$0xff]  ;;  %v711_v34 = vld [vmem:[%s940_s7 + $0x18] sm:$0xff]   ;;  %v715_v36 = vld [vmem:[%s943_s9 + $0x8] sm:$0xff]  }
   0x8   :  { %624 = vmatprep.subr.bf16.mxu0 %v718_v0  ;;  %636 = vmatprep.subr.bf16.mxu1 %v718_v0  ;;  %v708_v29 = vld [vmem:[%s940_s7] sm:$0xff]   ;;  %v713_v46 = vld [vmem:[%s942_s11 + $0x8] sm:$0xff]   ;;  %v716_v47 = vld [vmem:[%s943_s9 + $0x10] sm:$0xff]  }
   0x9   :  { %v714_v35 = vld [vmem:[%s943_s9] sm:$0xff]   ;;  %v717_v48 = vld [vmem:[%s943_s9 + $0x18] sm:$0xff]  }
   0xa   :  { %v570_v37 = vld [vmem:[%s944_s6] ss:$0 sm:$0xff] }
   0xb   :  { %625 = vmatpush3.bf16.msra.mxu0 %v696_v4  ;;  %637 = vmatpush3.bf16.msra.mxu1 %v700_v7  ;;  %v712_v44 = vld [vmem:[%s942_s11] sm:$0xff]  }
   0xc   :  { %626 = vmatprep.subr.bf16.mxu0 %v718_v0  ;;  %638 = vmatprep.subr.bf16.mxu1 %v718_v0  ;;  %v574_v49 = vld [vmem:[%s945_s8] ss:$0 sm:$0xff] }
   0xd   :  { %v586_v57 = vld [vmem:[%s946_s12] ss:$0 sm:$0xff] }
   0xe   :  { %v580_v63 = vld [vmem:[%s948_s10] ss:$0 sm:$0xff] }
   0xf   :  { %627 = vmatpush3.bf16.msra.mxu0 %v697_v6  ;;  %639 = vmatpush3.bf16.msra.mxu1 %v701_v9 }
  0x10   :  { %652 = vmatprep.subr.bf16.mxu0 %v718_v0  ;;  %640 = vmatprep.subr.bf16.mxu1 %v718_v0 }
  0x12   :  { %629 = vmatmul.mubr.msk.bf16.vlgmr.msra.gmra.mrb[0].mxu0 %vm87_vm1, %v47_v8 }
  0x13   :  { %656 = vmatprep.mubr.msk.bf16.mxu0 %vm719_vm0, %v718_v0  ;;  %641 = vmatpush3.bf16.msra.mxu1 %v702_v10 }
  0x14   :  { %642 = vmatprep.subr.bf16.mxu1 %v718_v0  ;;  %653 = vmatpush3.bf16.msra.mxu0 %v706_v14 }
  0x15   :  { %654 = vmatprep.subr.bf16.mxu0 %v718_v0 }
  0x17   :  { %643 = vmatpush3.bf16.msra.mxu1 %v703_v11 }
  0x18   :  { %644 = vmatprep.subr.bf16.mxu1 %v718_v0  ;;  %655 = vmatpush3.bf16.msra.mxu0 %v707_v23 }
  0x19   :  { %660 = vmatprep.subr.bf16.mxu0 %v718_v0 }
  0x1b   :  { %645 = vmatpush3.bf16.msra.mxu1 %v704_v12 }
  0x1c   :  { %646 = vmatprep.subr.bf16.mxu1 %v718_v0 }
  0x1f   :  { %647 = vmatpush3.bf16.msra.mxu1 %v705_v13 }
  0x20   :  { %672 = vmatprep.subr.bf16.mxu1 %v718_v0 }
  0xe5   :  { %v125_v16 = vpop.f32.mrb[0].mxu0 }
  0xe6   :  { %v126_v17 = vadd.f32 %v555_v15, %v125_v16  ;;  %v630_v18 = vpop.f32.mrb[1].mxu0 }
  0xe7   :  { %v128_v19 = vpop.f32.mrb[2].mxu0 }
  0xe8   :  { %v131_v20 = vmax.f32 %v126_v17, 0.0  ;;  %v631_v21 = vpop.f32.mrb[3].mxu0 }
  0xea   :  { %v132_v22 = vpack.c.bf16 %v131_v20, %v131_v20 }
  0xec   :  { %649 = vmatmul.mubr.bf16.vlgmr.msra.gmra.mrb[0].mxu1 %v132_v22 }
  0xed   :  { %680 = vmatprep.mubr.msk.bf16.mxu1 %vm719_vm0, %v718_v0  ;;  %673 = vmatpush3.bf16.msra.mxu1 %v714_v35 }
  0xee   :  { %674 = vmatprep.subr.bf16.mxu1 %v718_v0 }
  0xf1   :  { %675 = vmatpush3.bf16.msra.mxu1 %v715_v36 }
  0xf2   :  { %676 = vmatprep.subr.bf16.mxu1 %v718_v0 }
  0xf5   :  { %677 = vmatpush3.bf16.msra.mxu1 %v716_v47 }
  0xf6   :  { %678 = vmatprep.subr.bf16.mxu1 %v718_v0 }
  0xf9   :  { %679 = vmatpush3.bf16.msra.mxu1 %v717_v48 }
 0x1bf   :  { %v238_v25 = vpop.f32.mrb[0].mxu1 }
 0x1c0   :  { %v239_v26 = vadd.f32 %v561_v24, %v238_v25  ;;  %v650_v27 = vpop.f32.mrb[1].mxu1 }
 0x1c1   :  { %v241_v28 = vpop.f32.mrb[2].mxu1 }
 0x1c2   :  { %v244_v30 = vpack.c.bf16 %v239_v26, %v239_v26  ;;  %v651_v31 = vpop.f32.mrb[3].mxu1 }
 0x1c4   :  { %657 = vmatmul.mubr.msk.bf16.vlgmr.msra.gmra.mrb[4].mxu0 %vm268_vm2, %v244_v30 }
 0x1c5   :  { %661 = vmatpush3.bf16.msra.mxu0 %v708_v29  ;;  %668 = vmatprep.mubr.msk.bf16.mxu0 %vm719_vm0, %v718_v0 }
 0x1c6   :  { %662 = vmatprep.subr.bf16.mxu0 %v718_v0 }
 0x1c9   :  { %663 = vmatpush3.bf16.msra.mxu0 %v709_v32 }
 0x1ca   :  { %664 = vmatprep.subr.bf16.mxu0 %v718_v0 }
 0x1cd   :  { %665 = vmatpush3.bf16.msra.mxu0 %v710_v33 }
 0x1ce   :  { %666 = vmatprep.subr.bf16.mxu0 %v718_v0 }
 0x1d1   :  { %667 = vmatpush3.bf16.msra.mxu0 %v711_v34 }
 0x1d2   :  { %684 = vmatprep.subr.bf16.mxu0 %v718_v0 }
 0x297   :  { %v306_v38 = vpop.f32.mrb[4].mxu0 }
 0x298   :  { %v307_v39 = vadd.f32 %v570_v37, %v306_v38  ;;  %v658_v40 = vpop.f32.mrb[5].mxu0 }
 0x299   :  { %v309_v41 = vpop.f32.mrb[6].mxu0 }
 0x29a   :  { %v312_v42 = vmax.f32 %v307_v39, 0.0  ;;  %v659_v43 = vpop.f32.mrb[7].mxu0 }
 0x29c   :  { %v313_v45 = vpack.c.bf16 %v312_v42, %v312_v42 }
 0x29e   :  { %669 = vmatmul.mubr.msk.bf16.vlgmr.msra.gmra.mrb[8].mxu0 %vm87_vm1, %v313_v45 }
 0x29f   :  { %685 = vmatpush3.bf16.msra.mxu0 %v712_v44  ;;  %688 = vmatprep.mubr.msk.bf16.mxu0 %vm719_vm0, %v718_v0 }
 0x2a0   :  { %686 = vmatprep.subr.bf16.mxu0 %v718_v0 }
 0x2a3   :  { %687 = vmatpush3.bf16.msra.mxu0 %v713_v46 }
 0x2a6   :  { %689 = vmatmul.mubr.msk.bf16.vlgmr.msra.gmra.mrb[12].mxu0 %vm268_vm2, %v244_v30 }
 0x371   :  { %v390_v50 = vpop.f32.mrb[8].mxu0 }
 0x372   :  { %v391_v51 = vadd.f32 %v574_v49, %v390_v50  ;;  %v670_v52 = vpop.f32.mrb[9].mxu0 }
 0x373   :  { %v393_v53 = vpop.f32.mrb[10].mxu0 }
 0x374   :  { %v396_v54 = vmax.f32 %v391_v51, 0.0  ;;  %v671_v55 = vpop.f32.mrb[11].mxu0 }
 0x376   :  { %v397_v56 = vpack.c.bf16 %v396_v54, %v396_v54 }
 0x378   :  { %681 = vmatmul.mubr.msk.bf16.vlgmr.msra.gmra.mrb[4].mxu1 %vm87_vm1, %v397_v56 }
 0x379   :  { %v539_v58 = vpop.f32.mrb[12].mxu0 }
 0x37a   :  { %v540_v59 = vadd.f32 %v586_v57, %v539_v58  ;;  %v690_v60 = vpop.f32.mrb[13].mxu0 }
 0x37b   :  { %v542_v61 = vpop.f32.mrb[14].mxu0 }
 0x37c   :  { %546 = vst.msk [vmem:[%s947_s14] sm:$0x3] %vm545_vm3, %v540_v59  ;;  %v691_v62 = vpop.f32.mrb[15].mxu0 }
 0x44b   :  { %v474_v0 = vpop.f32.mrb[4].mxu1 }
 0x44c   :  { %v475_v1 = vadd.f32 %v580_v63, %v474_v0  ;;  %v682_v2 = vpop.f32.mrb[5].mxu1 }
 0x44d   :  { %v477_v3 = vpop.f32.mrb[6].mxu1 }
 0x44e   :  { %481 = vst.msk [vmem:[%s949_s13] sm:$0x3] %vm480_vm4, %v475_v1  ;;  %v683_v4 = vpop.f32.mrb[7].mxu1 }

// kernel: _lambda_.7
= control target key start
LH: loop header
LB: loop body
LE: loop exit
PB: predicated region body
PF: predicated region fallthrough
CT: control target
= control target key end

     0   :  { %v626_v21 = vmov 1966171168   ;;  %v100_v23 = vlaneseq  ;;  %v627_v40 = vmov 0.0   ;;  %vm628_vm0 = vmmov 0   ;;  %s766_s1 = inlined_call_operand.vmem [shape: bf16[576,64], index: 1, kind: input, shape index: {}]   ;;  %s767_s0 = inlined_call_operand.vmem [shape: bf16[2,576], index: 0, kind: input, shape index: {}]   ;;  %s768_s2 = inlined_call_operand.vmem [shape: f32[1,64], index: 2, kind: input, shape index: {}]   ;;  %s769_s3 = inlined_call_operand.vmem [shape: bf16[2,64], index: 3, kind: output, shape index: {}]  }
   0x1   :  { %v589_v0 = vld [vmem:[%s766_s1 + $0x40] sm:$0xff]   ;;  %v593_v4 = vld [vmem:[%s766_s1 + $0x48] sm:$0xff]   ;;  %v597_v8 = vld [vmem:[%s766_s1 + $0x50] sm:$0xff]   ;;  %v98_v22 = vunpack.c.l.s4 %v626_v21  ;;  %vm355_vm1 = vcmask 523264   ;;  %vm481_vm2 = vcmask 516096  }
   0x2   :  { %v590_v1 = vld [vmem:[%s766_s1] sm:$0xff]   ;;  %525 = vmatprep.subr.bf16.mxu0 %v589_v0  ;;  %v594_v5 = vld [vmem:[%s766_s1 + $0x8] sm:$0xff]   ;;  %v598_v9 = vld [vmem:[%s766_s1 + $0x10] sm:$0xff]   ;;  %v101_v29 = vshrl.u32 %v100_v23, 7 }
   0x3   :  { %v591_v2 = vld [vmem:[%s766_s1 + $0xc0] sm:$0xff]   ;;  %526 = vmatpush3.bf16.msra.mxu0 %v590_v1  ;;  %v595_v6 = vld [vmem:[%s766_s1 + $0xc8] sm:$0xff]   ;;  %v599_v10 = vld [vmem:[%s766_s1 + $0xd0] sm:$0xff]   ;;  %v99_v28 = vunpack.c.0.s8 %v98_v22 }
   0x4   :  { %v592_v3 = vld [vmem:[%s766_s1 + $0x80] sm:$0xff]   ;;  %547 = vmatprep.subr.bf16.mxu1 %v591_v2  ;;  %527 = vmatprep.subr.bf16.mxu0 %v593_v4  ;;  %v596_v7 = vld [vmem:[%s766_s1 + $0x88] sm:$0xff]   ;;  %v600_v11 = vld [vmem:[%s766_s1 + $0x90] sm:$0xff]  }
   0x5   :  { %548 = vmatpush3.bf16.msra.mxu1 %v592_v3  ;;  %v601_v12 = vld [vmem:[%s766_s1 + $0x58] sm:$0xff]   ;;  %v605_v16 = vld [vmem:[%s766_s1 + $0x60] sm:$0xff]   ;;  %v609_v20 = vld [vmem:[%s766_s1 + $0x68] sm:$0xff]   ;;  %v102_v34 = vsub.s32 %v99_v28, %v101_v29 }
   0x6   :  { %549 = vmatprep.subr.bf16.mxu1 %v595_v6  ;;  %v602_v13 = vld [vmem:[%s766_s1 + $0x18] sm:$0xff]   ;;  %v606_v17 = vld [vmem:[%s766_s1 + $0x20] sm:$0xff]   ;;  %v610_v24 = vld [vmem:[%s766_s1 + $0x28] sm:$0xff]  }
   0x7   :  { %528 = vmatpush3.bf16.msra.mxu0 %v594_v5  ;;  %v603_v14 = vld [vmem:[%s766_s1 + $0xd8] sm:$0xff]   ;;  %v607_v18 = vld [vmem:[%s766_s1 + $0xe0] sm:$0xff]   ;;  %v611_v25 = vld [vmem:[%s766_s1 + $0xe8] sm:$0xff]  }
   0x8   :  { %529 = vmatprep.subr.bf16.mxu0 %v597_v8  ;;  %v604_v15 = vld [vmem:[%s766_s1 + $0x98] sm:$0xff]   ;;  %v608_v19 = vld [vmem:[%s766_s1 + $0xa0] sm:$0xff]   ;;  %v612_v26 = vld [vmem:[%s766_s1 + $0xa8] sm:$0xff]  }
   0x9   :  { %550 = vmatpush3.bf16.msra.mxu1 %v596_v7  ;;  %v613_v27 = vld [vmem:[%s766_s1 + $0x70] sm:$0xff]   ;;  %v617_v33 = vld [vmem:[%s766_s1 + $0x78] sm:$0xff]   ;;  %v15_v37 = vld [vmem:[%s767_s0] sm:$0x1f] }
   0xa   :  { %551 = vmatprep.subr.bf16.mxu1 %v599_v10  ;;  %v614_v30 = vld [vmem:[%s766_s1 + $0x30] sm:$0xff]   ;;  %v618_v35 = vld [vmem:[%s766_s1 + $0x38] sm:$0xff]   ;;  %v103_v38 = vrot.slane %v15_v37, %v102_v34  ;;  %v622_v44 = vld [vmem:[%s766_s1 + $0x100] sm:$0xff]   ;;  %v96_v48 = vcombine.high %v15_v37, %v15_v37 }
   0xb   :  { %530 = vmatpush3.bf16.msra.mxu0 %v598_v9  ;;  %v615_v31 = vld [vmem:[%s766_s1 + $0xf0] sm:$0xff]   ;;  %v619_v36 = vld [vmem:[%s766_s1 + $0xf8] sm:$0xff]   ;;  %v623_v47 = vld [vmem:[%s766_s1 + $0x108] sm:$0xff]  }
   0xc   :  { %531 = vmatprep.subr.bf16.mxu0 %v601_v12  ;;  %v616_v32 = vld [vmem:[%s766_s1 + $0xb0] sm:$0xff]   ;;  %v621_v39 = vld [vmem:[%s766_s1 + $0xb8] sm:$0xff]   ;;  %v111_v41 = vcombine.high %v103_v38, %v103_v38  ;;  %v118_v42 = vrot.slane %v103_v38, %v102_v34  ;;  %v110_v50 = vrot.slane %v96_v48, %v102_v34  ;;  %v487_v54 = vld [vmem:[%s768_s2] ss:$0 sm:$0xff] }
   0xd   :  { %552 = vmatpush3.bf16.msra.mxu1 %v600_v11  ;;  %v624_v49 = vld [vmem:[%s766_s1 + $0x110] sm:$0xff]   ;;  %v625_v51 = vld [vmem:[%s766_s1 + $0x118] sm:$0xff]  }
   0xe   :  { %553 = vmatprep.subr.bf16.mxu1 %v603_v14  ;;  %v132_v43 = vrot.slane %v111_v41, %v102_v34  ;;  %v133_v45 = vcombine.high %v118_v42, %v118_v42  ;;  %v125_v52 = vrot.slane %v110_v50, %v102_v34 }
   0xf   :  { %532 = vmatpush3.bf16.msra.mxu0 %v602_v13 }
  0x10   :  { %533 = vmatprep.subr.bf16.mxu0 %v605_v16  ;;  %391 = vmatprep.mubr.bf16.mxu0 %v132_v43  ;;  %v134_v46 = vcombine.high %v132_v43, %v132_v43 }
  0x11   :  { %554 = vmatpush3.bf16.msra.mxu1 %v604_v15 }
  0x12   :  { %555 = vmatprep.subr.bf16.mxu1 %v607_v18  ;;  %431 = vmatprep.mubr.bf16.mxu1 %v134_v46 }
  0x13   :  { %534 = vmatpush3.bf16.msra.mxu0 %v606_v17 }
  0x14   :  { %535 = vmatprep.subr.bf16.mxu0 %v609_v20 }
  0x15   :  { %556 = vmatpush3.bf16.msra.mxu1 %v608_v19 }
  0x16   :  { %557 = vmatprep.subr.bf16.mxu1 %v611_v25 }
  0x17   :  { %536 = vmatpush3.bf16.msra.mxu0 %v610_v24 }
  0x18   :  { %537 = vmatprep.subr.bf16.mxu0 %v613_v27 }
  0x19   :  { %558 = vmatpush3.bf16.msra.mxu1 %v612_v26 }
  0x1a   :  { %559 = vmatprep.subr.bf16.mxu1 %v615_v31 }
  0x1b   :  { %538 = vmatpush3.bf16.msra.mxu0 %v614_v30 }
  0x1c   :  { %539 = vmatprep.subr.bf16.mxu0 %v617_v33 }
  0x1d   :  { %560 = vmatpush3.bf16.msra.mxu1 %v616_v32 }
  0x1e   :  { %561 = vmatprep.subr.bf16.mxu1 %v619_v36 }
  0x1f   :  { %540 = vmatpush3.bf16.msra.mxu0 %v618_v35 }
  0x20   :  { %574 = vmatprep.subr.bf16.mxu0 %v627_v40 }
  0x21   :  { %562 = vmatpush3.bf16.msra.mxu1 %v621_v39 }
  0x22   :  { %392 = vmatmul.mubr.bf16.vlgmr.msra.gmra.mrb[0].mxu0 %v118_v42 }
  0x23   :  { %575 = vmatpush3.bf16.msra.mxu0 %v622_v44  ;;  %582 = vmatprep.mubr.msk.bf16.mxu0 %vm628_vm0, %v627_v40 }
  0x24   :  { %432 = vmatmul.mubr.bf16.vlgmr.msra.gmra.mrb[0].mxu1 %v133_v45  ;;  %576 = vmatprep.subr.bf16.mxu0 %v627_v40 }
  0x27   :  { %577 = vmatpush3.bf16.msra.mxu0 %v623_v47 }
  0x28   :  { %578 = vmatprep.subr.bf16.mxu0 %v627_v40 }
  0x2b   :  { %579 = vmatpush3.bf16.msra.mxu0 %v624_v49 }
  0x2c   :  { %580 = vmatprep.subr.bf16.mxu0 %v627_v40 }
  0x2f   :  { %581 = vmatpush3.bf16.msra.mxu0 %v625_v51 }
  0x32   :  { %583 = vmatmul.mubr.msk.bf16.vlgmr.msra.gmra.mrb[4].mxu0 %vm355_vm1, %v125_v52 }
  0xf5   :  { %v541_v53 = vpop.f32.mrb[0].mxu0 }
  0xf6   :  { %v542_v55 = vpop.f32.mrb[1].mxu0 }
  0xf7   :  { %v543_v56 = vadd.f32 %v542_v55, %v541_v53  ;;  %v544_v57 = vpop.f32.mrb[2].mxu0  ;;  %v563_v58 = vpop.f32.mrb[0].mxu1 }
  0xf8   :  { %v545_v59 = vpop.f32.mrb[3].mxu0  ;;  %v564_v60 = vpop.f32.mrb[1].mxu1 }
  0xf9   :  { %v394_v61 = vadd.f32 %v543_v56, %v487_v54  ;;  %v565_v62 = vadd.f32 %v564_v60, %v563_v58  ;;  %v566_v63 = vpop.f32.mrb[2].mxu1 }
  0xfa   :  { %v567_v0 = vpop.f32.mrb[3].mxu1 }
  0xfb   :  { %v434_v1 = vadd.f32 %v565_v62, %v394_v61 }
 0x105   :  { %v473_v2 = vpop.f32.mrb[4].mxu0 }
 0x106   :  { %v474_v3 = vadd.f32 %v473_v2, %v434_v1  ;;  %v584_v4 = vpop.f32.mrb[5].mxu0 }
 0x107   :  { %v476_v5 = vpop.f32.mrb[6].mxu0 }
 0x108   :  { %v479_v6 = vmax.f32 %v474_v3, 0.0  ;;  %v585_v7 = vpop.f32.mrb[7].mxu0 }
 0x10a   :  { %v480_v8 = vpack.c.bf16 %v479_v6, %v479_v6 }
 0x10c   :  { %482 = vst.msk [vmem:[%s769_s3] sm:$0x1] %vm481_vm2, %v480_v8 }

// kernel: _lambda_.9
= control target key start
LH: loop header
LB: loop body
LE: loop exit
PB: predicated region body
PF: predicated region fallthrough
CT: control target
= control target key end

     0   :  { %15 = vsyncpa [#allocation3], 0  ;;  %s2059_s0 = inlined_call_operand.vmem [shape: f32[2,8,1], index: 0, kind: input, shape index: {}]   ;;  %s2060_s1 = inlined_call_operand.vmem [shape: f32[2,136,1], index: 1, kind: input, shape index: {}]   ;;  %s2061_s2 = inlined_call_operand.vmem [shape: f32[2,1,64], index: 2, kind: input, shape index: {}]   ;;  %s2062_s3 = inlined_call_operand.vmem [shape: f32[2,1,8], index: 3, kind: input, shape index: {}]   ;;  %s2063_s4 = inlined_call_operand.vmem [shape: f32[1,64], index: 4, kind: input, shape index: {}]   ;;  %s2064_s5 = inlined_call_operand.vmem [shape: bf16[64,64], index: 5, kind: input, shape index: {}]   ;;  %s2065_s6 = inlined_call_operand.vmem [shape: f32[1,64], index: 6, kind: input, shape index: {}]   ;;  %s2066_s7 = inlined_call_operand.vmem [shape: bf16[64,4], index: 7, kind: input, shape index: {}]   ;;  %s2067_s8 = inlined_call_operand.vmem [shape: f32[1,4], index: 8, kind: input, shape index: {}]   ;;  %s2068_s9 = inlined_call_operand.vmem [shape: f32[8,136], index: 9, kind: input, shape index: {}]   ;;  %s2069_s10 = inlined_call_operand.hbm [shape: f32[2,4,8], index: 10, kind: output, shape index: {}]  }
   0x1   :  { %17 = vsyncpa [#allocation3 + $0x1], 0  ;;  %s1739_s13 = smov 0   ;;  %s1741_s14 = smov 0  }
   0x2   :  { %s1743_s15 = smov 0   ;;  %s1745_s16 = smov 0  }
   0x3 LB: > { %s1760_s17 = sadd.s32 4294967295, %s1675_s16   ;;  %s1320_s18 = sadd.s32 4294967294, %s1675_s16   ;;  %s1675_s16 = sphi %s1745_s16, %s2075_s16   ;;  %s1671_s15 = sphi %s1743_s15, %s2074_s15   ;;  %s1667_s14 = sphi %s1741_s14, %s2073_s14   ;;  %s1663_s13 = sphi %s1739_s13, %s2072_s13  }
   0x4   : > { %s1764_s19 = sadd.s32 1, %s1675_s16   ;;  %s260_s20 = sadd.s32 1, %s1671_s15 }
   0x5   : > { %s257_s21 = ssub.s32 %s1675_s16, %s1764_s19  ;;  %p270_p0 = scmp.ne.s32.totalorder %s1671_s15, %s1667_s14 }
   0x6   : > { %p258_p1 = scmp.eq.s32.totalorder %s257_s21, 0  ;;  %p271_p2 = scmp.eq.s32.totalorder %s1760_s17, 1 }
   0x7   : > { %p276_p3 = scmp.ne.s32.totalorder %s1667_s14, %s1663_s13  ;;  %p277_p4 = scmp.eq.s32.totalorder %s1320_s18, 1 }
   0x8   : > { %s1775_s22 = scalar_select %p258_p1, %s1671_s15, %s260_s20  }
   0x9   : > { %p1777_p5 = por %p271_p2, %p270_p0  ;;  %p1781_p6 = por %p277_p4, %p276_p3 }
   0xa   : > { %p1323_p7 = scmp.ge.s32.totalorder %s1675_s16, 1  ;;  %p340_p8 = scmp.lt.s32.totalorder %s1675_s16, 3 }
   0xc   : > { %p341_p9 = pnand %p1323_p7, %p340_p8 }
   0xd   : > { %p388_p10 = scmp.lt.s32.totalorder (!%p341_p9), %s1760_s17, 1  ;;  %v1565_v0 = vld [vmem:[%s2064_s5] sm:$0xff] (!%p341_p9)   ;;  %v1677_v1 = vmov (!%p341_p9), 0   ;;  %v1678_v2 = vmov (!%p341_p9), 0.0   ;;  %v1566_v8 = vld [vmem:[%s2064_s5 + $0x8] sm:$0xff] (!%p341_p9)   ;;  %v1567_v10 = vld [vmem:[%s2064_s5 + $0x10] sm:$0xff] (!%p341_p9)  }
   0xe   : > { %344 = sbr.rel (%p341_p9) target bundleno = 1305 (0x519), region = 60  ;;  %1564 = vset.pattern.permute.xlu1 (!%p341_p9), %v1677_v1  ;;  %1563 = vset.pattern.permute.xlu0 (!%p341_p9), %v1677_v1  ;;  %v1568_v13 = vld [vmem:[%s2064_s5 + $0x18] sm:$0xff] (!%p341_p9)   ;;  %vm1679_vm0 = vmmov (!%p341_p9), 0   ;;  %v1569_v25 = vld [vmem:[%s2066_s7] sm:$0xff] (!%p341_p9)   ;;  %v1570_v26 = vld [vmem:[%s2066_s7 + $0x8] sm:$0xff] (!%p341_p9)   ;;  %vm623_vm1 = vcmask (!%p341_p9), 523264  }
   0xf   : > { %1405 = vmatprep.subr.bf16.mxu0 (!%p341_p9), %v1678_v2  ;;  %1449 = vmatprep.subr.bf16.mxu1 (!%p341_p9), %v1678_v2  ;;  %v1850_v27 = vld [vmem:[%s2063_s4] ss:$0 sm:$0xff] (!%p341_p9)  ;;  %vm1072_vm2 = vcmask (!%p341_p9), 64512   ;;  %s1681_s26 = smov (!%p341_p9), 4   ;;  %s1376_s29 = sshll.u32 (!%p341_p9), %s1760_s17, 6 }
  0x10   : > { %1406 = vmatpush3.bf16.msra.mxu0 (!%p341_p9), %v1565_v0  ;;  %1413 = vmatprep.mubr.msk.bf16.mxu0 (!%p341_p9), %vm1679_vm0, %v1678_v2  ;;  %s2017_s21 = scalar_lea.hbm (!%p341_p9), %s2069_s10, %s1376_s29 }
  0x11   : > { %1407 = vmatprep.subr.bf16.mxu0 (!%p341_p9), %v1678_v2  ;;  %1457 = vmatprep.mubr.msk.bf16.mxu1 (!%p341_p9), %vm1679_vm0, %v1678_v2 }
  0x12   : > { %1450 = vmatpush3.bf16.msra.mxu1 (!%p341_p9), %v1569_v25 }
  0x13   : > { %1451 = vmatprep.subr.bf16.mxu1 (!%p341_p9), %v1678_v2 }
  0x14   : > { %1408 = vmatpush3.bf16.msra.mxu0 (!%p341_p9), %v1566_v8 }
  0x15   : > { %s1792_s27 = scalar_select %p388_p10, %s1760_s17, 1  ;;  %1409 = vmatprep.subr.bf16.mxu0 %v1678_v2 }
  0x16   : > { %1452 = vmatpush3.bf16.msra.mxu1 %v1570_v26  ;;  %s1683_s17 = smov [#allocation2]  }
  0x17   : > { %s1517_s28 = smul.u32 136, %s1792_s27  ;;  %1453 = vmatprep.subr.bf16.mxu1 %v1678_v2  ;;  %s399_s30 = scalar_lea.vmem %s2061_s2, %s1792_s27 }
  0x18   : > { %1410 = vmatpush3.bf16.msra.mxu0 %v1567_v10  ;;  %v1857_v31 = vld [vmem:[%s399_s30] ss:$0 sm:$0xff]  ;;  %s402_s25 = scalar_lea.vmem %s2062_s3, %s1792_s27 }
  0x19   : > { %s1801_s11 = scalar_lea.vmem %s2060_s1, %s1517_s28  ;;  %1411 = vmatprep.subr.bf16.mxu0 %v1678_v2  ;;  %s1325_s28 = sshll.u32 %s1792_s27, 3 }
  0x1a   : > { %v407_v3 = vld [vmem:[%s1801_s11 + $0x10] sm:$0xff]  ;;  %v405_v4 = vld [vmem:[%s1801_s11] sm:$0xff]  ;;  %v408_v5 = vld [vmem:[%s1801_s11 + $0x18] sm:$0xff]  ;;  %s391_s12 = scalar_lea.vmem %s2059_s0, %s1325_s28  ;;  %s1682_s27 = smov 124  }
  0x1b   : > { %439 = vperm.xlu1 %1564, %v407_v3   ;;  %429 = vperm.xlu0 %1563, %v405_v4   ;;  %v406_v6 = vld [vmem:[%s1801_s11 + $0x8] sm:$0xff]  ;;  %v409_v9 = vld [vmem:[%s1801_s11 + $0x20] sm:$0xff]  ;;  %v412_v11 = vld [vmem:[%s1801_s11 + $0x38] sm:$0xff]  ;;  %s385_s28 = sand.u32 1, %s1667_s14  }
  0x1c   : > { %v410_v7 = vld [vmem:[%s1801_s11 + $0x28] sm:$0xff]  ;;  %v411_v12 = vld [vmem:[%s1801_s11 + $0x30] sm:$0xff]  ;;  %v413_v15 = vld [vmem:[%s1801_s11 + $0x40] sm:$0xff]  ;;  %1412 = vmatpush3.bf16.msra.mxu0 %v1568_v13 }
  0x1d   : > { %v414_v14 = vld [vmem:[%s1801_s11 + $0x48] sm:$0xff]  ;;  %v416_v16 = vld [vmem:[%s1801_s11 + $0x58] sm:$0xff]  ;;  %v415_v17 = vld [vmem:[%s1801_s11 + $0x50] sm:$0xff] }
  0x1e   : > { %v418_v18 = vld [vmem:[%s1801_s11 + $0x68] sm:$0xff]  ;;  %v417_v19 = vld [vmem:[%s1801_s11 + $0x60] sm:$0xff]  ;;  %v420_v20 = vld [vmem:[%s1801_s11 + $0x78] sm:$0xff] }
  0x1f   : > { %444 = vperm.xlu1 %1564, %v408_v5   ;;  %434 = vperm.xlu0 %1563, %v406_v6   ;;  %v419_v21 = vld [vmem:[%s1801_s11 + $0x70] sm:$0xff]  ;;  %v404_v22 = vld [vmem:[%s391_s12] sm:$0xff] }
  0x20   : > { %v1146_v23 = vmul.f32 0.5, %v404_v22  ;;  %v421_v24 = vld [vmem:[%s1801_s11 + $0x80] sm:$0xff]  ;;  %s1324_s11 = sshll.u32 %s385_s28, 2 }
  0x21   : > { %s387_s30 = scalar_lea.vmem [#allocation2], %s1324_s11 }
  0x22   : > { %s1231_s12 = sshll.u32 %s387_s30, 4  ;;  %s2019_s12 = int_to_ptr.vmem [resolvable:$true] %s1231_s12 }
  0x23   : > { %454 = vperm.xlu1 %1564, %v410_v7   ;;  %449 = vperm.xlu0 %1563, %v409_v9  }
  0x27   : > { %464 = vperm.xlu1 %1564, %v412_v11   ;;  %459 = vperm.xlu0 %1563, %v411_v12  }
  0x2b   : > { %474 = vperm.xlu1 %1564, %v414_v14   ;;  %469 = vperm.xlu0 %1563, %v413_v15  }
  0x2f   : > { %484 = vperm.xlu1 %1564, %v416_v16   ;;  %479 = vperm.xlu0 %1563, %v415_v17  }
  0x33   : > { %494 = vperm.xlu1 %1564, %v418_v18   ;;  %489 = vperm.xlu0 %1563, %v417_v19  }
  0x37   : > { %504 = vperm.xlu1 %1564, %v420_v20   ;;  %499 = vperm.xlu0 %1563, %v419_v21  }
  0x3b   : > { %509 = vperm.xlu0 %1563, %v421_v24   ;;  %1149 = vperm.xlu1 %1564, %v1146_v23  }
  0x9a   : > { %v440_v28 = vpop.permute.xlu1 %439  ;;  %v430_v29 = vpop.permute.xlu0 %429 }
  0x9b   : > { %v518_v30 = vmul.f32 %v1850_v27, %v430_v29  ;;  %v520_v36 = vmul.f32 %v1850_v27, %v440_v28 }
  0x9d   : > { %v541_v33 = vadd.f32 %v1857_v31, %v518_v30  ;;  %v543_v42 = vadd.f32 %v1857_v31, %v520_v36 }
  0x9e   : > { %v435_v32 = vpop.permute.xlu0 %434  ;;  %v445_v35 = vpop.permute.xlu1 %444 }
  0x9f   : > { %v519_v34 = vmul.f32 %v1850_v27, %v435_v32  ;;  %v521_v37 = vmul.f32 %v1850_v27, %v445_v35  ;;  %v558_v40 = vmax.f32 %v541_v33, 0.0  ;;  %v560_v47 = vmax.f32 %v543_v42, 0.0 }
  0xa1   : > { %v542_v38 = vadd.f32 %v1857_v31, %v519_v34  ;;  %v544_v43 = vadd.f32 %v1857_v31, %v521_v37 }
  0xa2   : > { %v450_v39 = vpop.permute.xlu0 %449  ;;  %v455_v45 = vpop.permute.xlu1 %454 }
  0xa3   : > { %v559_v41 = vmax.f32 %v542_v38, 0.0  ;;  %v561_v48 = vmax.f32 %v544_v43, 0.0  ;;  %v523_v49 = vmul.f32 %v1850_v27, %v455_v45  ;;  %v522_v50 = vmul.f32 %v1850_v27, %v450_v39  ;;  %v1927_v45 = vld [vmem:[%s2065_s6] ss:$0 sm:$0xff] }
  0xa5   : > { %v575_v44 = vpack.c.bf16 %v559_v41, %v558_v40  ;;  %v576_v52 = vpack.c.bf16 %v561_v48, %v560_v47  ;;  %v546_v53 = vadd.f32 %v1857_v31, %v523_v49  ;;  %v545_v54 = vadd.f32 %v1857_v31, %v522_v50 }
  0xa6   : > { %v460_v46 = vpop.permute.xlu0 %459  ;;  %v465_v55 = vpop.permute.xlu1 %464 }
  0xa7   : > { %1414 = vmatmul.mubr.msk.bf16.vlgmr.msra.gmra.mrb[0].mxu0 %vm623_vm1, %v575_v44  ;;  %v563_v57 = vmax.f32 %v546_v53, 0.0  ;;  %v562_v58 = vmax.f32 %v545_v54, 0.0  ;;  %v525_v59 = vmul.f32 %v1850_v27, %v465_v55  ;;  %v524_v60 = vmul.f32 %v1850_v27, %v460_v46  ;;  %v1572_v44 = vld [vmem:[%s2066_s7 + $0x18] sm:$0xff]  }
  0xa8   : > { %1417 = vmatprep.mubr.msk.bf16.mxu0 %vm1679_vm0, %v1678_v2 }
  0xa9   : > { %v577_v62 = vpack.c.bf16 %v563_v57, %v562_v58  ;;  %v548_v63 = vadd.f32 %v1857_v31, %v525_v59  ;;  %v547_v0 = vadd.f32 %v1857_v31, %v524_v60 }
  0xaa   : > { %v470_v51 = vpop.permute.xlu0 %469  ;;  %v475_v1 = vpop.permute.xlu1 %474 }
  0xab   : > { %v565_v4 = vmax.f32 %v548_v63, 0.0  ;;  %v564_v5 = vmax.f32 %v547_v0, 0.0  ;;  %v527_v6 = vmul.f32 %v1850_v27, %v475_v1  ;;  %v526_v7 = vmul.f32 %v1850_v27, %v470_v51 }
  0xad   : > { %v578_v10 = vpack.c.bf16 %v565_v4, %v564_v5  ;;  %v550_v11 = vadd.f32 %v1857_v31, %v527_v6  ;;  %v549_v12 = vadd.f32 %v1857_v31, %v526_v7 }
  0xae   : > { %v480_v56 = vpop.permute.xlu0 %479  ;;  %v485_v14 = vpop.permute.xlu1 %484 }
  0xaf   : > { %1418 = vmatmul.mubr.msk.bf16.gmra.mrb[4].mxu0 %vm623_vm1, %v576_v52  ;;  %v567_v15 = vmax.f32 %v550_v11, 0.0  ;;  %v566_v16 = vmax.f32 %v549_v12, 0.0  ;;  %v529_v17 = vmul.f32 %v1850_v27, %v485_v14  ;;  %v528_v18 = vmul.f32 %v1850_v27, %v480_v56 }
  0xb0   : > { %1421 = vmatprep.mubr.msk.bf16.mxu0 %vm1679_vm0, %v1678_v2 }
  0xb1   : > { %v579_v19 = vpack.c.bf16 %v567_v15, %v566_v16  ;;  %v552_v20 = vadd.f32 %v1857_v31, %v529_v17  ;;  %v551_v21 = vadd.f32 %v1857_v31, %v528_v18 }
  0xb2   : > { %v490_v61 = vpop.permute.xlu0 %489  ;;  %v495_v22 = vpop.permute.xlu1 %494 }
  0xb3   : > { %v569_v23 = vmax.f32 %v552_v20, 0.0  ;;  %v568_v24 = vmax.f32 %v551_v21, 0.0  ;;  %v531_v25 = vmul.f32 %v1850_v27, %v495_v22  ;;  %v530_v26 = vmul.f32 %v1850_v27, %v490_v61 }
  0xb5   : > { %v580_v28 = vpack.c.bf16 %v569_v23, %v568_v24  ;;  %v554_v29 = vadd.f32 %v1857_v31, %v531_v25  ;;  %v553_v30 = vadd.f32 %v1857_v31, %v530_v26 }
  0xb6   : > { %v500_v3 = vpop.permute.xlu0 %499  ;;  %v505_v32 = vpop.permute.xlu1 %504 }
  0xb7   : > { %1422 = vmatmul.mubr.msk.bf16.gmra.mrb[8].mxu0 %vm623_vm1, %v577_v62  ;;  %v571_v33 = vmax.f32 %v554_v29, 0.0  ;;  %v570_v34 = vmax.f32 %v553_v30, 0.0  ;;  %v533_v35 = vmul.f32 %v1850_v27, %v505_v32  ;;  %v532_v36 = vmul.f32 %v1850_v27, %v500_v3 }
  0xb8   : > { %1425 = vmatprep.mubr.msk.bf16.mxu0 %vm1679_vm0, %v1678_v2 }
  0xb9   : > { %v581_v37 = vpack.c.bf16 %v571_v33, %v570_v34  ;;  %v556_v38 = vadd.f32 %v1857_v31, %v533_v35  ;;  %v555_v39 = vadd.f32 %v1857_v31, %v532_v36 }
  0xba   : > { %v510_v8 = vpop.permute.xlu0 %509 }
  0xbb   : > { %v534_v9 = vmul.f32 %v1850_v27, %v510_v8  ;;  %v573_v40 = vmax.f32 %v556_v38, 0.0  ;;  %v572_v41 = vmax.f32 %v555_v39, 0.0 }
  0xbd   : > { %v557_v13 = vadd.f32 %v1857_v31, %v534_v9  ;;  %v582_v42 = vpack.c.bf16 %v573_v40, %v572_v41  ;;  %v1571_v31 = vld [vmem:[%s2066_s7 + $0x10] sm:$0xff]  }
  0xbe   : > { %1454 = vmatpush3.bf16.msra.mxu1 %v1571_v31 }
  0xbf   : > { %1426 = vmatmul.mubr.msk.bf16.gmra.mrb[12].mxu0 %vm623_vm1, %v578_v10  ;;  %v574_v43 = vmax.f32 %v557_v13, 0.0  ;;  %1455 = vmatprep.subr.bf16.mxu1 %v1678_v2 }
  0xc0   : > { %1429 = vmatprep.mubr.msk.bf16.mxu0 %vm1679_vm0, %v1678_v2 }
  0xc1   : > { %v583_v27 = vpack.c.bf16 %v574_v43, %v574_v43 }
  0xc2   : > { %1456 = vmatpush3.bf16.msra.mxu1 %v1572_v44 }
  0xc7   : > { %1430 = vmatmul.mubr.msk.bf16.gmra.mrb[16].mxu0 %vm623_vm1, %v579_v19 }
  0xc8   : > { %1433 = vmatprep.mubr.msk.bf16.mxu0 %vm1679_vm0, %v1678_v2 }
  0xcf   : > { %1434 = vmatmul.mubr.msk.bf16.gmra.mrb[20].mxu0 %vm623_vm1, %v580_v28 }
  0xd0   : > { %1437 = vmatprep.mubr.msk.bf16.mxu0 %vm1679_vm0, %v1678_v2 }
  0xd7   : > { %1438 = vmatmul.mubr.msk.bf16.gmra.mrb[24].mxu0 %vm623_vm1, %v581_v37 }
  0xd8   : > { %1441 = vmatprep.mubr.msk.bf16.mxu0 %vm1679_vm0, %v1678_v2 }
  0xdf   : > { %1442 = vmatmul.mubr.msk.bf16.gmra.mrb[28].mxu0 %vm623_vm1, %v582_v42 }
  0xe0   : > { %1445 = vmatprep.mubr.msk.bf16.mxu0 %vm1679_vm0, %v1678_v2 }
  0xe7   : > { %1446 = vmatmul.mubr.msk.bf16.gmra.mrb[32].mxu0 %vm623_vm1, %v583_v27 }
 0x17a   : > { %v685_v46 = vpop.f32.mrb[0].mxu0 }
 0x17b   : > { %v686_v47 = vadd.f32 %v1927_v45, %v685_v46  ;;  %v1415_v48 = vpop.f32.mrb[1].mxu0 }
 0x17c   : > { %v688_v49 = vpop.f32.mrb[2].mxu0 }
 0x17d   : > { %v689_v50 = vadd.f32 %v1927_v45, %v688_v49  ;;  %v1416_v51 = vpop.f32.mrb[3].mxu0  ;;  %v755_v52 = vmax.f32 %v686_v47, 0.0 }
 0x17f   : > { %v756_v53 = vmax.f32 %v689_v50, 0.0 }
 0x181   : > { %v772_v54 = vpack.c.bf16 %v756_v53, %v755_v52 }
 0x182   : > { %v693_v55 = vpop.f32.mrb[4].mxu0 }
 0x183   : > { %v694_v56 = vadd.f32 %v1927_v45, %v693_v55  ;;  %v1419_v57 = vpop.f32.mrb[5].mxu0  ;;  %1458 = vmatmul.mubr.msk.bf16.vlgmr.msra.gmra.mrb[0].mxu1 %vm623_vm1, %v772_v54 }
 0x184   : > { %v696_v58 = vpop.f32.mrb[6].mxu0  ;;  %1461 = vmatprep.mubr.msk.bf16.mxu1 %vm1679_vm0, %v1678_v2 }
 0x185   : > { %v697_v59 = vadd.f32 %v1927_v45, %v696_v58  ;;  %v1420_v60 = vpop.f32.mrb[7].mxu0  ;;  %v757_v61 = vmax.f32 %v694_v56, 0.0 }
 0x187   : > { %v758_v62 = vmax.f32 %v697_v59, 0.0 }
 0x189   : > { %v773_v63 = vpack.c.bf16 %v758_v62, %v757_v61 }
 0x18a   : > { %v701_v0 = vpop.f32.mrb[8].mxu0 }
 0x18b   : > { %v702_v1 = vadd.f32 %v1927_v45, %v701_v0  ;;  %v1423_v3 = vpop.f32.mrb[9].mxu0  ;;  %1462 = vmatmul.mubr.msk.bf16.gmra.mrb[4].mxu1 %vm623_vm1, %v773_v63  ;;  %v1680_v63 = vmov 0.0|0.0   ;;  %v1071_v0 = vld [vmem:[%s2068_s9 + $0x8] sm:$0xff] }
 0x18c   : > { %v704_v4 = vpop.f32.mrb[10].mxu0  ;;  %1465 = vmatprep.mubr.msk.bf16.mxu1 %vm1679_vm0, %v1678_v2  ;;  %1493 = vmatprep.subr.bf16.mxu0 %v1680_v63 }
 0x18d   : > { %v705_v5 = vadd.f32 %v1927_v45, %v704_v4  ;;  %v1424_v6 = vpop.f32.mrb[11].mxu0  ;;  %v759_v7 = vmax.f32 %v702_v1, 0.0  ;;  %1374 = vmatprep.mubr.msk.f32.mxu0 %vm1072_vm2, %v1071_v0 }
 0x18f   : > { %v760_v8 = vmax.f32 %v705_v5, 0.0 }
 0x191   : > { %v774_v9 = vpack.c.bf16 %v760_v8, %v759_v7 }
 0x192   : > { %v709_v10 = vpop.f32.mrb[12].mxu0 }
 0x193   : > { %v710_v11 = vadd.f32 %v1927_v45, %v709_v10  ;;  %v1427_v12 = vpop.f32.mrb[13].mxu0  ;;  %1466 = vmatmul.mubr.msk.bf16.gmra.mrb[8].mxu1 %vm623_vm1, %v774_v9 }
 0x194   : > { %v712_v13 = vpop.f32.mrb[14].mxu0  ;;  %1469 = vmatprep.mubr.msk.bf16.mxu1 %vm1679_vm0, %v1678_v2 }
 0x195   : > { %v713_v14 = vadd.f32 %v1927_v45, %v712_v13  ;;  %v1428_v15 = vpop.f32.mrb[15].mxu0  ;;  %v761_v16 = vmax.f32 %v710_v11, 0.0 }
 0x197   : > { %v762_v17 = vmax.f32 %v713_v14, 0.0 }
 0x199   : > { %v775_v18 = vpack.c.bf16 %v762_v17, %v761_v16 }
 0x19a   : > { %v717_v19 = vpop.f32.mrb[16].mxu0 }
 0x19b   : > { %v718_v20 = vadd.f32 %v1927_v45, %v717_v19  ;;  %v1431_v21 = vpop.f32.mrb[17].mxu0  ;;  %1470 = vmatmul.mubr.msk.bf16.gmra.mrb[12].mxu1 %vm623_vm1, %v775_v18 }
 0x19c   : > { %v720_v22 = vpop.f32.mrb[18].mxu0  ;;  %1473 = vmatprep.mubr.msk.bf16.mxu1 %vm1679_vm0, %v1678_v2 }
 0x19d   : > { %v721_v23 = vadd.f32 %v1927_v45, %v720_v22  ;;  %v1432_v24 = vpop.f32.mrb[19].mxu0  ;;  %v763_v25 = vmax.f32 %v718_v20, 0.0 }
 0x19f   : > { %v764_v26 = vmax.f32 %v721_v23, 0.0 }
 0x1a1   : > { %v776_v28 = vpack.c.bf16 %v764_v26, %v763_v25 }
 0x1a2   : > { %v725_v29 = vpop.f32.mrb[20].mxu0 }
 0x1a3   : > { %v726_v30 = vadd.f32 %v1927_v45, %v725_v29  ;;  %v1435_v32 = vpop.f32.mrb[21].mxu0  ;;  %1474 = vmatmul.mubr.msk.bf16.gmra.mrb[16].mxu1 %vm623_vm1, %v776_v28 }
 0x1a4   : > { %v728_v33 = vpop.f32.mrb[22].mxu0  ;;  %1477 = vmatprep.mubr.msk.bf16.mxu1 %vm1679_vm0, %v1678_v2 }
 0x1a5   : > { %v729_v34 = vadd.f32 %v1927_v45, %v728_v33  ;;  %v1436_v35 = vpop.f32.mrb[23].mxu0  ;;  %v765_v36 = vmax.f32 %v726_v30, 0.0 }
 0x1a7   : > { %v766_v37 = vmax.f32 %v729_v34, 0.0 }
 0x1a9   : > { %v777_v38 = vpack.c.bf16 %v766_v37, %v765_v36 }
 0x1aa   : > { %v733_v39 = vpop.f32.mrb[24].mxu0 }
 0x1ab   : > { %v734_v40 = vadd.f32 %v1927_v45, %v733_v39  ;;  %v1439_v41 = vpop.f32.mrb[25].mxu0  ;;  %1478 = vmatmul.mubr.msk.bf16.gmra.mrb[20].mxu1 %vm623_vm1, %v777_v38 }
 0x1ac   : > { %v736_v42 = vpop.f32.mrb[26].mxu0  ;;  %1481 = vmatprep.mubr.msk.bf16.mxu1 %vm1679_vm0, %v1678_v2 }
 0x1ad   : > { %v737_v43 = vadd.f32 %v1927_v45, %v736_v42  ;;  %v1440_v27 = vpop.f32.mrb[27].mxu0  ;;  %v767_v31 = vmax.f32 %v734_v40, 0.0 }
 0x1af   : > { %v768_v44 = vmax.f32 %v737_v43, 0.0 }
 0x1b1   : > { %v778_v46 = vpack.c.bf16 %v768_v44, %v767_v31 }
 0x1b2   : > { %v741_v47 = vpop.f32.mrb[28].mxu0 }
 0x1b3   : > { %v742_v48 = vadd.f32 %v1927_v45, %v741_v47  ;;  %v1443_v49 = vpop.f32.mrb[29].mxu0  ;;  %1482 = vmatmul.mubr.msk.bf16.gmra.mrb[24].mxu1 %vm623_vm1, %v778_v46 }
 0x1b4   : > { %v744_v50 = vpop.f32.mrb[30].mxu0  ;;  %1485 = vmatprep.mubr.msk.bf16.mxu1 %vm1679_vm0, %v1678_v2 }
 0x1b5   : > { %v745_v51 = vadd.f32 %v1927_v45, %v744_v50  ;;  %v1444_v52 = vpop.f32.mrb[31].mxu0  ;;  %v769_v53 = vmax.f32 %v742_v48, 0.0 }
 0x1b7   : > { %v770_v54 = vmax.f32 %v745_v51, 0.0 }
 0x1b9   : > { %v779_v55 = vpack.c.bf16 %v770_v54, %v769_v53 }
 0x1ba   : > { %v749_v56 = vpop.f32.mrb[32].mxu0 }
 0x1bb   : > { %v750_v57 = vadd.f32 %v1927_v45, %v749_v56  ;;  %v1447_v58 = vpop.f32.mrb[33].mxu0  ;;  %1486 = vmatmul.mubr.msk.bf16.gmra.mrb[28].mxu1 %vm623_vm1, %v779_v55  ;;  %v1978_v45 = vld [vmem:[%s2067_s8] ss:$0 sm:$0xff] }
 0x1bc   : > { %v752_v59 = vpop.f32.mrb[34].mxu0  ;;  %1489 = vmatprep.mubr.msk.bf16.mxu1 %vm1679_vm0, %v1678_v2 }
 0x1bd   : > { %v771_v60 = vmax.f32 %v750_v57, 0.0  ;;  %v1448_v61 = vpop.f32.mrb[35].mxu0 }
 0x1bf   : > { %v780_v62 = vpack.c.bf16 %v771_v60, %v771_v60 }
 0x1c3   : > { %1490 = vmatmul.mubr.msk.bf16.gmra.mrb[32].mxu1 %vm623_vm1, %v780_v62 }
 0x256   : > { %v881_v1 = vpop.f32.mrb[0].mxu1 }
 0x257   : > { %v882_v3 = vadd.f32 %v1978_v45, %v881_v1  ;;  %v1459_v4 = vpop.f32.mrb[1].mxu1 }
 0x258   : > { %v884_v5 = vpop.f32.mrb[2].mxu1 }
 0x259   : > { %v968_v6 = vmin.f32 %v882_v3, 0.0  ;;  %v885_v7 = vadd.f32 %v1978_v45, %v884_v5  ;;  %v1460_v8 = vpop.f32.mrb[3].mxu1  ;;  %vm951_vm3 = vcmp.gt.f32.partialorder %v882_v3, 0.0 }
 0x25b   : > { %v985_v9 = vmul.f32 1.442695, %v968_v6  ;;  %v969_v10 = vmin.f32 %v885_v7, 0.0  ;;  %vm952_vm4 = vcmp.gt.f32.partialorder %v885_v7, 0.0 }
 0x25d   : > { %1573 = vpow2.f32 %v985_v9  ;;  %v987_v11 = vmul.f32 1.442695, %v969_v10 }
 0x25e   : > { %v889_v12 = vpop.f32.mrb[4].mxu1 }
 0x25f   : > { %1575 = vpow2.f32 %v987_v11  ;;  %v890_v13 = vadd.f32 %v1978_v45, %v889_v12  ;;  %v1463_v14 = vpop.f32.mrb[5].mxu1 }
 0x260   : > { %v892_v15 = vpop.f32.mrb[6].mxu1 }
 0x261   : > { %v970_v16 = vmin.f32 %v890_v13, 0.0  ;;  %v893_v17 = vadd.f32 %v1978_v45, %v892_v15  ;;  %v1464_v18 = vpop.f32.mrb[7].mxu1  ;;  %vm953_vm5 = vcmp.gt.f32.partialorder %v890_v13, 0.0 }
 0x263   : > { %v989_v19 = vmul.f32 1.442695, %v970_v16  ;;  %v971_v20 = vmin.f32 %v893_v17, 0.0  ;;  %vm954_vm6 = vcmp.gt.f32.partialorder %v893_v17, 0.0 }
 0x265   : > { %1577 = vpow2.f32 %v989_v19  ;;  %v991_v21 = vmul.f32 1.442695, %v971_v20 }
 0x266   : > { %v897_v22 = vpop.f32.mrb[8].mxu1 }
 0x267   : > { %v1574_v23 = vpop.eup %1573  ;;  %1579 = vpow2.f32 %v991_v21  ;;  %v898_v24 = vadd.f32 %v1978_v45, %v897_v22  ;;  %v1467_v25 = vpop.f32.mrb[9].mxu1 }
 0x268   : > { %v1357_v26 = vadd.f32 -1.0, %v1574_v23  ;;  %v900_v28 = vpop.f32.mrb[10].mxu1 }
 0x269   : > { %v1576_v29 = vpop.eup %1575  ;;  %v972_v30 = vmin.f32 %v898_v24, 0.0  ;;  %v901_v32 = vadd.f32 %v1978_v45, %v900_v28  ;;  %v1468_v33 = vpop.f32.mrb[11].mxu1  ;;  %vm955_vm7 = vcmp.gt.f32.partialorder %v898_v24, 0.0 }
 0x26a   : > { %v1036_v34 = vsel %vm951_vm3, %v882_v3, %v1357_v26  ;;  %v1358_v35 = vadd.f32 -1.0, %v1576_v29 }
 0x26b   : > { %v993_v36 = vmul.f32 1.442695, %v972_v30  ;;  %v973_v37 = vmin.f32 %v901_v32, 0.0  ;;  %v1053_v39 = vadd.f32 1.0, %v1036_v34  ;;  %vm956_vm8 = vcmp.gt.f32.partialorder %v901_v32, 0.0 }
 0x26c   : > { %v1037_v38 = vsel %vm952_vm4, %v885_v7, %v1358_v35  ;;  %vm1215_vm4 = vcmask 60416  }
 0x26d   : > { %v1054_v40 = vadd.f32 1.0, %v1037_v38  ;;  %1581 = vpow2.f32 %v993_v36  ;;  %v995_v41 = vmul.f32 1.442695, %v973_v37 }
 0x26e   : > { %v905_v42 = vpop.f32.mrb[12].mxu1 }
 0x26f   : > { %v1578_v43 = vpop.eup %1577  ;;  %v1494_v27 = vpack.c.bf16 %v1054_v40, %v1053_v39  ;;  %1583 = vpow2.f32 %v995_v41  ;;  %v906_v31 = vadd.f32 %v1978_v45, %v905_v42  ;;  %v1471_v44 = vpop.f32.mrb[13].mxu1 }
 0x270   : > { %v1359_v46 = vadd.f32 -1.0, %v1578_v43  ;;  %v908_v47 = vpop.f32.mrb[14].mxu1 }
 0x271   : > { %v1580_v48 = vpop.eup %1579  ;;  %v974_v49 = vmin.f32 %v906_v31, 0.0  ;;  %v909_v50 = vadd.f32 %v1978_v45, %v908_v47  ;;  %v1472_v51 = vpop.f32.mrb[15].mxu1  ;;  %1495 = vmatpush1.bf16.msra.mxu0 %v1494_v27  ;;  %vm957_vm9 = vcmp.gt.f32.partialorder %v906_v31, 0.0 }
 0x272   : > { %v1038_v52 = vsel %vm953_vm5, %v890_v13, %v1359_v46  ;;  %v1360_v53 = vadd.f32 -1.0, %v1580_v48  ;;  %1496 = vmatprep.subr.bf16.mxu0 %v1680_v63 }
 0x273   : > { %v997_v54 = vmul.f32 1.442695, %v974_v49  ;;  %v975_v55 = vmin.f32 %v909_v50, 0.0  ;;  %v1055_v57 = vadd.f32 1.0, %v1038_v52  ;;  %vm958_vm10 = vcmp.gt.f32.partialorder %v909_v50, 0.0 }
 0x274   : > { %v1039_v56 = vsel %vm954_vm6, %v893_v17, %v1360_v53 }
 0x275   : > { %v1056_v58 = vadd.f32 1.0, %v1039_v56  ;;  %1585 = vpow2.f32 %v997_v54  ;;  %v999_v59 = vmul.f32 1.442695, %v975_v55 }
 0x276   : > { %v913_v60 = vpop.f32.mrb[16].mxu1 }
 0x277   : > { %v1582_v61 = vpop.eup %1581  ;;  %v1497_v62 = vpack.c.bf16 %v1056_v58, %v1055_v57  ;;  %1587 = vpow2.f32 %v999_v59  ;;  %v914_v0 = vadd.f32 %v1978_v45, %v913_v60  ;;  %v1475_v1 = vpop.f32.mrb[17].mxu1 }
 0x278   : > { %v1361_v3 = vadd.f32 -1.0, %v1582_v61  ;;  %v916_v4 = vpop.f32.mrb[18].mxu1 }
 0x279   : > { %v1584_v5 = vpop.eup %1583  ;;  %v976_v6 = vmin.f32 %v914_v0, 0.0  ;;  %v917_v7 = vadd.f32 %v1978_v45, %v916_v4  ;;  %v1476_v8 = vpop.f32.mrb[19].mxu1  ;;  %1498 = vmatpush1.bf16.msra.mxu0 %v1497_v62  ;;  %vm959_vm11 = vcmp.gt.f32.partialorder %v914_v0, 0.0 }
 0x27a   : > { %v1040_v9 = vsel %vm955_vm7, %v898_v24, %v1361_v3  ;;  %v1362_v10 = vadd.f32 -1.0, %v1584_v5  ;;  %1499 = vmatprep.subr.bf16.mxu0 %v1680_v63 }
 0x27b   : > { %v1001_v11 = vmul.f32 1.442695, %v976_v6  ;;  %v977_v12 = vmin.f32 %v917_v7, 0.0  ;;  %v1057_v14 = vadd.f32 1.0, %v1040_v9  ;;  %vm960_vm12 = vcmp.gt.f32.partialorder %v917_v7, 0.0 }
 0x27c   : > { %v1041_v13 = vsel %vm956_vm8, %v901_v32, %v1362_v10 }
 0x27d   : > { %v1058_v15 = vadd.f32 1.0, %v1041_v13  ;;  %1589 = vpow2.f32 %v1001_v11  ;;  %v1003_v16 = vmul.f32 1.442695, %v977_v12 }
 0x27e   : > { %v921_v17 = vpop.f32.mrb[20].mxu1 }
 0x27f   : > { %v1586_v18 = vpop.eup %1585  ;;  %v1500_v19 = vpack.c.bf16 %v1058_v15, %v1057_v14  ;;  %1591 = vpow2.f32 %v1003_v16  ;;  %v922_v20 = vadd.f32 %v1978_v45, %v921_v17  ;;  %v1479_v21 = vpop.f32.mrb[21].mxu1 }
 0x280   : > { %v1363_v22 = vadd.f32 -1.0, %v1586_v18  ;;  %v924_v23 = vpop.f32.mrb[22].mxu1 }
 0x281   : > { %v1588_v24 = vpop.eup %1587  ;;  %v978_v25 = vmin.f32 %v922_v20, 0.0  ;;  %v925_v26 = vadd.f32 %v1978_v45, %v924_v23  ;;  %v1480_v28 = vpop.f32.mrb[23].mxu1  ;;  %1501 = vmatpush1.bf16.msra.mxu0 %v1500_v19  ;;  %vm961_vm13 = vcmp.gt.f32.partialorder %v922_v20, 0.0 }
 0x282   : > { %v1042_v29 = vsel %vm957_vm9, %v906_v31, %v1363_v22  ;;  %v1364_v30 = vadd.f32 -1.0, %v1588_v24  ;;  %1502 = vmatprep.subr.bf16.mxu0 %v1680_v63 }
 0x283   : > { %v1005_v32 = vmul.f32 1.442695, %v978_v25  ;;  %v979_v33 = vmin.f32 %v925_v26, 0.0  ;;  %v1059_v35 = vadd.f32 1.0, %v1042_v29  ;;  %vm962_vm14 = vcmp.gt.f32.partialorder %v925_v26, 0.0 }
 0x284   : > { %v1043_v34 = vsel %vm958_vm10, %v909_v50, %v1364_v30 }
 0x285   : > { %v1060_v36 = vadd.f32 1.0, %v1043_v34  ;;  %1593 = vpow2.f32 %v1005_v32  ;;  %v1007_v37 = vmul.f32 1.442695, %v979_v33 }
 0x286   : > { %v929_v38 = vpop.f32.mrb[24].mxu1 }
 0x287   : > { %v1590_v39 = vpop.eup %1589  ;;  %v1503_v40 = vpack.c.bf16 %v1060_v36, %v1059_v35  ;;  %1595 = vpow2.f32 %v1007_v37  ;;  %v930_v41 = vadd.f32 %v1978_v45, %v929_v38  ;;  %v1483_v42 = vpop.f32.mrb[25].mxu1 }
 0x288   : > { %v1365_v43 = vadd.f32 -1.0, %v1590_v39  ;;  %v932_v27 = vpop.f32.mrb[26].mxu1 }
 0x289   : > { %v1592_v31 = vpop.eup %1591  ;;  %v980_v44 = vmin.f32 %v930_v41, 0.0  ;;  %v933_v46 = vadd.f32 %v1978_v45, %v932_v27  ;;  %v1484_v47 = vpop.f32.mrb[27].mxu1  ;;  %1504 = vmatpush1.bf16.msra.mxu0 %v1503_v40  ;;  %vm963_vm15 = vcmp.gt.f32.partialorder %v930_v41, 0.0  ;;  %v1070_v27 = vld [vmem:[%s2068_s9] sm:$0xff] }
 0x28a   : > { %v1044_v48 = vsel %vm959_vm11, %v914_v0, %v1365_v43  ;;  %v1366_v49 = vadd.f32 -1.0, %v1592_v31  ;;  %1505 = vmatprep.subr.bf16.mxu0 %v1680_v63 }
 0x28b   : > { %v1009_v50 = vmul.f32 1.442695, %v980_v44  ;;  %v981_v51 = vmin.f32 %v933_v46, 0.0  ;;  %v1061_v53 = vadd.f32 1.0, %v1044_v48  ;;  %vm964_vm0 = vcmp.gt.f32.partialorder %v933_v46, 0.0 }
 0x28c   : > { %v1045_v52 = vsel %vm960_vm12, %v917_v7, %v1366_v49 }
 0x28d   : > { %v1062_v54 = vadd.f32 1.0, %v1045_v52  ;;  %1597 = vpow2.f32 %v1009_v50  ;;  %v1011_v55 = vmul.f32 1.442695, %v981_v51  ;;  %v1150_v50 = vpop.permute.xlu1 %1149 }
 0x28e   : > { %v937_v56 = vpop.f32.mrb[28].mxu1 }
 0x28f   : > { %v1594_v57 = vpop.eup %1593  ;;  %v1506_v58 = vpack.c.bf16 %v1062_v54, %v1061_v53  ;;  %1599 = vpow2.f32 %v1011_v55  ;;  %v938_v59 = vadd.f32 %v1978_v45, %v937_v56  ;;  %v1487_v60 = vpop.f32.mrb[29].mxu1 }
 0x290   : > { %v1367_v61 = vadd.f32 -1.0, %v1594_v57  ;;  %v940_v62 = vpop.f32.mrb[30].mxu1 }
 0x291   : > { %v1596_v0 = vpop.eup %1595  ;;  %v982_v1 = vmin.f32 %v938_v59, 0.0  ;;  %v941_v3 = vadd.f32 %v1978_v45, %v940_v62  ;;  %v1488_v4 = vpop.f32.mrb[31].mxu1  ;;  %1507 = vmatpush1.bf16.msra.mxu0 %v1506_v58  ;;  %vm965_vm1 = vcmp.gt.f32.partialorder %v938_v59, 0.0 }
 0x292   : > { %v1046_v5 = vsel %vm961_vm13, %v922_v20, %v1367_v61  ;;  %v1368_v6 = vadd.f32 -1.0, %v1596_v0  ;;  %1508 = vmatprep.subr.bf16.mxu0 %v1680_v63 }
 0x293   : > { %v1013_v7 = vmul.f32 1.442695, %v982_v1  ;;  %v983_v8 = vmin.f32 %v941_v3, 0.0  ;;  %v1063_v10 = vadd.f32 1.0, %v1046_v5  ;;  %vm966_vm2 = vcmp.gt.f32.partialorder %v941_v3, 0.0 }
 0x294   : > { %v1047_v9 = vsel %vm962_vm14, %v925_v26, %v1368_v6 }
 0x295   : > { %v1064_v11 = vadd.f32 1.0, %v1047_v9  ;;  %1601 = vpow2.f32 %v1013_v7  ;;  %v1015_v12 = vmul.f32 1.442695, %v983_v8 }
 0x296   : > { %v945_v13 = vpop.f32.mrb[32].mxu1 }
 0x297   : > { %v1598_v14 = vpop.eup %1597  ;;  %v1509_v15 = vpack.c.bf16 %v1064_v11, %v1063_v10  ;;  %1603 = vpow2.f32 %v1015_v12  ;;  %v946_v16 = vadd.f32 %v1978_v45, %v945_v13  ;;  %v1491_v17 = vpop.f32.mrb[33].mxu1 }
 0x298   : > { %v1369_v18 = vadd.f32 -1.0, %v1598_v14  ;;  %v948_v19 = vpop.f32.mrb[34].mxu1 }
 0x299   : > { %v1600_v20 = vpop.eup %1599  ;;  %v984_v21 = vmin.f32 %v946_v16, 0.0  ;;  %v1492_v22 = vpop.f32.mrb[35].mxu1  ;;  %1510 = vmatpush1.bf16.msra.mxu0 %v1509_v15  ;;  %vm967_vm3 = vcmp.gt.f32.partialorder %v946_v16, 0.0 }
 0x29a   : > { %v1048_v23 = vsel %vm963_vm15, %v930_v41, %v1369_v18  ;;  %v1370_v24 = vadd.f32 -1.0, %v1600_v20  ;;  %1511 = vmatprep.subr.bf16.mxu0 %v1680_v63 }
 0x29b   : > { %v1017_v25 = vmul.f32 1.442695, %v984_v21  ;;  %v1065_v28 = vadd.f32 1.0, %v1048_v23 }
 0x29c   : > { %v1049_v26 = vsel %vm964_vm0, %v933_v46, %v1370_v24  ;;  %v423_v46 = vld [vmem:[%s402_s25] sm:$0x1]  ;;  %s1218_s25 = scalar_lea.sflag [#allocation3], %s385_s28 }
 0x29d   : > { %v1066_v29 = vadd.f32 1.0, %v1049_v26  ;;  %1605 = vpow2.f32 %v1017_v25  ;;  %v424_v47 = vmul.f32 1.442695, %v423_v46 }
 0x29f   : > { %v1602_v30 = vpop.eup %1601  ;;  %v1512_v45 = vpack.c.bf16 %v1066_v29, %v1065_v28  ;;  %1607 = vpow2.f32 %v424_v47 }
 0x2a0   : > { %v1371_v32 = vadd.f32 -1.0, %v1602_v30 }
 0x2a1   : > { %v1604_v33 = vpop.eup %1603  ;;  %1513 = vmatpush1.bf16.msra.mxu0 %v1512_v45 }
 0x2a2   : > { %v1050_v34 = vsel %vm965_vm1, %v938_v59, %v1371_v32  ;;  %v1372_v35 = vadd.f32 -1.0, %v1604_v33  ;;  %1514 = vmatprep.subr.bf16.mxu0 %v1680_v63  ;;  %v1154_v63 = vlaneseq }
 0x2a3   : > { %v1067_v37 = vadd.f32 1.0, %v1050_v34 }
 0x2a4   : > { %v1051_v36 = vsel %vm966_vm2, %v941_v3, %v1372_v35  ;;  %v1155_v31 = vshrl.u32 %v1154_v63, 7 }
 0x2a5   : > { %v1068_v38 = vadd.f32 1.0, %v1051_v36 }
 0x2a6   : > { %v1156_v44 = vsub.s32 0, %v1155_v31 }
 0x2a7   : > { %v1606_v39 = vpop.eup %1605  ;;  %v1515_v40 = vpack.c.bf16 %v1068_v38, %v1067_v37 }
 0x2a8   : > { %v1373_v41 = vadd.f32 -1.0, %v1606_v39  ;;  %v1168_v48 = vrot.slane %v423_v46, %v1156_v44 }
 0x2a9   : > { %1516 = vmatpush1.bf16.msra.mxu0 %v1515_v40 }
 0x2aa   : > { %v1052_v42 = vsel %vm967_vm3, %v946_v16, %v1373_v41  ;;  %1108 = vmatprep.subr.mxu0 %v1678_v2  ;;  %1169 = vrot.lane.b32.xlu1 %v1168_v48, %s1681_s26  ;;  %v1608_v2 = vpop.eup %1607 }
 0x2ab   : > { %v1069_v43 = vadd.f32 1.0, %v1052_v42  ;;  %v1157_v49 = vrot.slane %v1608_v2, %v1156_v44 }
 0x2ad   : > { %1109 = vmatpush1.msra.mxu0 %v1069_v43 }
 0x2ae   : > { %1141 = vmatmul.mubr.f32.vlgmr.msra.gmra.mrb[36].mxu0 %v1070_v27 }
 0x31c   : > { %v1170_v55 = vpop.permute.xlu1 %1169 }
 0x381   : > { %v1142_v51 = vpop.f32.mrb[36].mxu0 }
 0x382   : > { %v1152_v52 = vmul.f32 %v1150_v50, %v1142_v51  ;;  %v1144_v53 = vpop.f32.mrb[37].mxu0 }
 0x384   : > { %1160 = vrot.lane.b32.xlu0 %v1152_v52, %s1681_s26  ;;  %s1613_s26 = scalar_lea.vmem %s2019_s12, 64 }
 0x385   : > { %p1614_p11 = scmp.ne.s32.totalorder %s2019_s12, %s1613_s26 }
 0x387   : > { %p1615_p12 = pnand %p1614_p11, %p1777_p5 }
 0x389   : > { %p1616_p13 = pneg %p1615_p12 }
 0x3f6   : > { %v1161_v54 = vpop.permute.xlu0 %1160 }
 0x3f7   : > { %v1163_v56 = vmul.f32 %v1161_v54, %v1157_v49 }
 0x3f9   : > { %v1172_v57 = vadd.f32 %v1170_v55, %v1163_v56 }
 0x3fb   : > { %v1173_v58 = vsub.f32 0.0, %v1172_v57 }
 0x3fd   : > { %v1174_v59 = vmul.f32 1.442695, %v1173_v58 }
 0x3ff   : > { %1609 = vpow2.f32 %v1174_v59 }
 0x409   : > { %v1610_v60 = vpop.eup %1609 }
 0x40a   : > { %v1176_v61 = vadd.f32 1.0, %v1610_v60 }
 0x40c   : > { %1611 = vrcp.f32 %v1176_v61 }
 0x416   : > { %v1612_v62 = vpop.eup %1611 }
 0x417   : > { %1180 = vrot.lane.b32.xlu0 %v1612_v62, %s1682_s27  ;;  %s1617_s27 = sshll.u32 %s1683_s17, 4  ;;  %s1618_s27 = int_to_ptr.vmem [resolvable:$false] %s1617_s27 }
 0x418   : > { %s1619_s11 = scalar_lea.vmem %s1618_s27, 128  ;;  %p1620_p0 = scmp.lt.s32.totalorder %s2019_s12, %s1618_s27 }
 0x419   : > { %p1621_p1 = scmp.lt.s32.totalorder %s1619_s11, %s1613_s26 }
 0x41b   : > { %p1622_p2 = por %p1621_p1, %p1620_p0 }
 0x41d   : > { %p1623_p3 = pnand %p1622_p2, %p1616_p13 }
 0x489   : > { %v1181_v0 = vpop.permute.xlu0 %1180 }
 0x48a   : > { %1183 = vxpose.xlu1.b32.start.end [1/1] (short) (narrow) %v1181_v0, 8 }
 0x50a   : > { %v1199_v1 = vpop.trf.xlu1 }
 0x50b   : > { %1216 = vst.msk [vmem:[%s387_s30] sm:$0xf] %vm1215_vm4, %v1199_v1 }
 0x50c   : > { %1626 = shalt.err (!%p1623_p3)
}
 0x50d   : > { %s1627_s28 = scalar_lea.hbm %s2017_s21, 64  ;;  %s1631_s18 = scalar_lea.hbm %s2069_s10, 128 }
 0x50e   : > { %p1628_p4 = scmp.ne.s32.totalorder %s2017_s21, %s1627_s28  ;;  %p1632_p9 = scmp.lt.u32.totalorder %s2017_s21, %s2069_s10 }
 0x50f   : > { %p1633_p10 = scmp.lt.u32.totalorder %s1631_s18, %s1627_s28  ;;  %p1635_p12 = scmp.lt.u32.totalorder %s1627_s28, %s2017_s21 }
 0x510   : > { %p1629_p7 = pnand %p1628_p4, %p1777_p5 }
 0x511   : > { %p1634_p11 = por %p1633_p10, %p1632_p9 }
 0x512   : > { %p1630_p8 = pneg %p1629_p7 }
 0x513   : > { %p1636_p13 = por %p1635_p12, %p1634_p11 }
 0x515   : > { %p1637_p0 = pnand %p1636_p13, %p1630_p8 }
 0x517   : > { %1640 = shalt.err (!%p1637_p0)
}
 0x518   : > { %1518 = dma.vmem_to_hbm [thread:$0]  (%p1777_p5), %s2019_s12, 64, %s2017_s21, %s1218_s25  }
 0x519 PF: > { %p1524_p1 = scmp.ge.s32.totalorder %s1675_s16, 2  ;;  %s1243_s26 = sand.u32 1, %s1663_s13  }
 0x51a   : > { %s1244_s27 = scalar_lea.sflag [#allocation3], %s1243_s26 }
 0x51b   : > { %p1521_p2 = pnand %p1524_p1, %p1781_p6 }
 0x51d   : > { %1658 = dma.done.wait (!%p1521_p2), %s1244_s27, 64  }
 0x51e   : > { %1660 = vsyncadd (!%p1521_p2), %s1244_s27, 4294967232  ;;  %p20_p3 = scmp.ge.s32.totalorder %s1764_s19, 4   ;;  %s2072_s13 = smov %s1667_s14 }
 0x51f   : > { %s2073_s14 = smov %s1671_s15  ;;  %s2074_s15 = smov %s1775_s22 }
 0x520   : > { %s2075_s16 = smov %s1764_s19  ;;  %22 = sbr.rel (!%p20_p3) target bundleno = 3 (0x3), region = 104 }
 0x527   :  { %1249 = vsyncpa [#allocation3], 1 }
 0x528   :  { %1251 = vsyncpa [#allocation3 + $0x1], 1 }

</bundles_post_ra>
